<compile_context>
chip_gen: v7x
topology: tpu7x:2x2x1
jax: 0.10.0
libtpu: 0.0.40
codegen_flags: <defaults>
</compile_context>

<pallas_src>
import functools

import jax
import jax.numpy as jnp
from jax.experimental import pallas as pl
from jax.experimental.pallas import tpu as pltpu


# ----------------------------------------------------------------------------
# Subpixel (parity) weight stacking for ConvTranspose2d(3, stride=2, pad=1, op=1)
#
# out[2m+a, 2n+b, co] = sum_v  x_v[m, n, :] @ Wblock[v, p]        (p = 2a + b)
#   with shifted inputs  x00=x[m,n], x01=x[m,n+1], x10=x[m+1,n], x11=x[m+1,n+1]
#   (zero outside the image) and Wblock taken from the PyTorch weight
#   w_pt[ci, co, ky, kx] via  oy = 2*iy - 1 + ky,  ox = 2*ix - 1 + kx.
# ----------------------------------------------------------------------------
def _stack_convt_weight(w_pt):
    """w_pt: (Cin, Cout, 3, 3) -> stacked (4*Cin, 4*Cout).

    Row blocks: shift variant v in [x00, x01, x10, x11].
    Column blocks: output phase p = 2a+b (a=row parity, b=col parity).
    """
    cin, cout = w_pt.shape[0], w_pt.shape[1]
    z = jnp.zeros((cin, cout), w_pt.dtype)
    w = lambda ky, kx: w_pt[:, :, ky, kx]
    blocks = [
        # p=0 (ee)   p=1 (eo)   p=2 (oe)   p=3 (oo)
        [w(1, 1),   w(1, 2),   w(2, 1),   w(2, 2)],   # v = x00
        [z,         w(1, 0),   z,         w(2, 0)],   # v = x01
        [z,         z,         w(0, 1),   w(0, 2)],   # v = x10
        [z,         z,         z,         w(0, 0)],   # v = x11
    ]
    return jnp.concatenate(
        [jnp.concatenate(row, axis=1) for row in blocks], axis=0)


# ----------------------------------------------------------------------------
# Kernel 1: fused subpixel ConvTranspose2d + GroupNorm(16) + LeakyReLU(0.2)
# ----------------------------------------------------------------------------
def _convt_gn_lrelu_kernel(x_ref, w_ref, b_ref, m2_ref, g_ref, bb_ref,
                           o_ref, xs_ref, *, spatial_w, eps=1e-5):
    # x_ref : (1, HW+W+1, Cin)  channels-last, row-major flattened spatial,
    #                           padded with W+1 zero rows (shifts = plain slices).
    # w_ref : (4*Cin, 4*Cout)   stacked subpixel weights (conv dtype).
    # b_ref : (1, 4*Cout)       conv bias tiled over the 4 phases (f32).
    # m2_ref: (4*Cout, 4*Cout)  group-averaging matrix, includes 1/(4*HW*cg).
    # g_ref, bb_ref: (1, 4*Cout) GN gamma / beta tiled over the 4 phases.
    # o_ref : (1, HW, 4*Cout)   phase-blocked output (lane-dense: 4*C >= 128).
    # xs_ref: (HW, 4*Cin)       VMEM scratch, stacked shifted input (conv dtype).
    hw = o_ref.shape[1]
    cin = x_ref.shape[2]
    wsp = spatial_w
    x = x_ref[0]                                           # (HW+W+1, Cin), f32

    # Flattened-index boundary masks for the row-major spatial grid.
    idx = jax.lax.broadcasted_iota(jnp.int32, (hw, 1), 0)
    last_col = (idx % wsp) == (wsp - 1)                    # n == W-1
    last_row = idx >= (hw - wsp)                           # m == H-1

    cdt = xs_ref.dtype
    # Build the 4 shifted copies ONCE (one slice each, not 9 per-tap slices),
    # packed into a 128-lane operand for a single K=4*Cin MXU push.
    xs_ref[:, 0 * cin:1 * cin] = x[0:hw, :].astype(cdt)
    xs_ref[:, 1 * cin:2 * cin] = jnp.where(
        last_col, 0.0, x[1:1 + hw, :]).astype(cdt)
    xs_ref[:, 2 * cin:3 * cin] = jnp.where(
        last_row, 0.0, x[wsp:wsp + hw, :]).astype(cdt)
    xs_ref[:, 3 * cin:4 * cin] = jnp.where(
        last_col | last_row, 0.0, x[wsp + 1:wsp + 1 + hw, :]).astype(cdt)

    # One matmul covers all 9 taps of all 4 output phases (f32 accumulation).
    acc = jnp.dot(xs_ref[...], w_ref[...],
                  preferred_element_type=jnp.float32)      # (HW, 4*Cout)
    acc = acc + b_ref[...]

    # Fused GroupNorm(16) + LeakyReLU(0.2) epilogue.  The whole (2H,2W) output
    # of this batch element is resident in VMEM (HW sublanes x 4 phase blocks),
    # so statistics are exact.  Centered two-pass to avoid E[x^2]-mean^2
    # cancellation (review correctness concern).
    s = jnp.sum(acc, axis=0, keepdims=True)                # (1, 4*Cout)
    mean = jnp.dot(s, m2_ref[...], preferred_element_type=jnp.float32)
    d = acc - mean
    ss = jnp.sum(d * d, axis=0, keepdims=True)
    var = jnp.dot(ss, m2_ref[...], preferred_element_type=jnp.float32)
    y = d * jax.lax.rsqrt(var + eps) * g_ref[...] + bb_ref[...]
    o_ref[0] = jnp.where(y >= 0, y, 0.2 * y)


def convt_gn_lrelu_2x(x_blc, w_pt, b_pt, gn_w, gn_b, *, spatial_hw,
                      num_groups=16, conv_dtype=jnp.float32):
    """Fused ConvTranspose2d(C,C,3,s2,p1,op1) + GroupNorm(16,C) + LeakyReLU(0.2).

    x_blc: (B, H*W, C) channels-last (module's (B, L, C) layout).
    Returns phase-blocked (B, H*W, 4*C); lane block p=2a+b holds pixel (2m+a, 2n+b).
    """
    hh, ww = spatial_hw
    B, L, Cin = x_blc.shape
    assert L == hh * ww
    Cout = w_pt.shape[1]
    cg = Cout // num_groups

    w_stack = _stack_convt_weight(w_pt).astype(conv_dtype)       # (4Cin, 4Cout)
    bias4 = jnp.tile(b_pt.astype(jnp.float32), 4).reshape(1, 4 * Cout)
    gamma4 = jnp.tile(gn_w.astype(jnp.float32), 4).reshape(1, 4 * Cout)
    beta4 = jnp.tile(gn_b.astype(jnp.float32), 4).reshape(1, 4 * Cout)
    grp = (jnp.arange(4 * Cout) % Cout) // cg
    m2 = (grp[:, None] == grp[None, :]).astype(jnp.float32) / (4.0 * L * cg)

    # Pad W+1 zero rows so the in-kernel shifts are plain slices.
    xp = jnp.pad(x_blc.astype(jnp.float32), ((0, 0), (0, ww + 1), (0, 0)))
    Lp = L + ww + 1

    # TODO(synk): for very large H*W (v7x 64 MiB VMEM), add a spatial row-tile
    # grid axis with two-pass (accumulated) GroupNorm statistics; one grid step
    # per batch element keeps the fused GN exact and simple at these sizes.
    kern = functools.partial(_convt_gn_lrelu_kernel, spatial_w=ww)
    return pl.pallas_call(
        kern,
        out_shape=jax.ShapeDtypeStruct((B, L, 4 * Cout), jnp.float32),
        grid_spec=pltpu.PrefetchScalarGridSpec(
            num_scalar_prefetch=0,
            grid=(B,),
            in_specs=[
                pl.BlockSpec((1, Lp, Cin), lambda b: (b, 0, 0)),
                pl.BlockSpec((4 * Cin, 4 * Cout), lambda b: (0, 0)),
                pl.BlockSpec((1, 4 * Cout), lambda b: (0, 0)),
                pl.BlockSpec((4 * Cout, 4 * Cout), lambda b: (0, 0)),
                pl.BlockSpec((1, 4 * Cout), lambda b: (0, 0)),
                pl.BlockSpec((1, 4 * Cout), lambda b: (0, 0)),
            ],
            out_specs=pl.BlockSpec((1, L, 4 * Cout), lambda b: (b, 0, 0)),
            scratch_shapes=[pltpu.VMEM((L, 4 * Cin), conv_dtype)],
        ),
        compiler_params=pltpu.CompilerParams(
            dimension_semantics=("parallel",)),
    )(xp, w_stack, bias4, m2, gamma4, beta4)


# ----------------------------------------------------------------------------
# Kernel 2: final subpixel ConvTranspose2d (no norm), channels-first so the
# store is lane-dense (Ho*Wo lanes) even though Cout = in_chans = 4.
# ----------------------------------------------------------------------------
def _convt_final_kernel(x_ref, wt_ref, b_ref, o_ref, xs_ref, *, spatial_w):
    # x_ref : (1, Cin, L+W+1)  channels-first, flattened spatial padded by W+1 zeros.
    # wt_ref: (4*Cout, 4*Cin)  transposed stacked subpixel weights (conv dtype).
    # b_ref : (4*Cout, 1)      conv bias column, tiled over the 4 phases (f32).
    # o_ref : (1, 4*Cout, L)   phase-blocked channels-first output (L lanes).
    # xs_ref: (4*Cin, L)       VMEM scratch, stacked shifted input (conv dtype).
    ell = o_ref.shape[2]
    cin = x_ref.shape[1]
    wsp = spatial_w
    x = x_ref[0]                                           # (Cin, L+W+1), f32

    idx = jax.lax.broadcasted_iota(jnp.int32, (1, ell), 1)
    last_col = (idx % wsp) == (wsp - 1)
    last_row = idx >= (ell - wsp)

    cdt = xs_ref.dtype
    xs_ref[0 * cin:1 * cin, :] = x[:, 0:ell].astype(cdt)
    xs_ref[1 * cin:2 * cin, :] = jnp.where(
        last_col, 0.0, x[:, 1:1 + ell]).astype(cdt)
    xs_ref[2 * cin:3 * cin, :] = jnp.where(
        last_row, 0.0, x[:, wsp:wsp + ell]).astype(cdt)
    xs_ref[3 * cin:4 * cin, :] = jnp.where(
        last_col | last_row, 0.0, x[:, wsp + 1:wsp + 1 + ell]).astype(cdt)

    acc = jnp.dot(wt_ref[...], xs_ref[...],
                  preferred_element_type=jnp.float32)      # (4*Cout, L)
    o_ref[0] = acc + b_ref[...]


def convt_final_2x(x_bcl, w_pt, b_pt, *, spatial_hw, conv_dtype=jnp.float32):
    """ConvTranspose2d(Cin, Cout, 3, s2, p1, op1), channels-first in/out.

    x_bcl: (B, Cin, H*W). Returns phase-blocked (B, 4*Cout, H*W).
    """
    hh, ww = spatial_hw
    B, Cin, L = x_bcl.shape
    assert L == hh * ww
    Cout = w_pt.shape[1]

    wt = _stack_convt_weight(w_pt).T.astype(conv_dtype)          # (4Cout, 4Cin)
    bias_col = jnp.tile(b_pt.astype(jnp.float32), 4).reshape(4 * Cout, 1)

    xp = jnp.pad(x_bcl.astype(jnp.float32), ((0, 0), (0, 0), (0, ww + 1)))
    Lp = L + ww + 1

    kern = functools.partial(_convt_final_kernel, spatial_w=ww)
    return pl.pallas_call(
        kern,
        out_shape=jax.ShapeDtypeStruct((B, 4 * Cout, L), jnp.float32),
        grid_spec=pltpu.PrefetchScalarGridSpec(
            num_scalar_prefetch=0,
            grid=(B,),
            in_specs=[
                pl.BlockSpec((1, Cin, Lp), lambda b: (b, 0, 0)),
                pl.BlockSpec((4 * Cout, 4 * Cin), lambda b: (0, 0)),
                pl.BlockSpec((4 * Cout, 1), lambda b: (0, 0)),
            ],
            out_specs=pl.BlockSpec((1, 4 * Cout, L), lambda b: (b, 0, 0)),
            scratch_shapes=[pltpu.VMEM((4 * Cin, L), conv_dtype)],
        ),
        compiler_params=pltpu.CompilerParams(
            dimension_semantics=("parallel",)),
    )(xp, wt, bias_col)


# ----------------------------------------------------------------------------
# Wrapper-side layout plumbing (phase de-interleave) — pure XLA glue.
# ----------------------------------------------------------------------------
def _phase_to_channels_last(y, hh, ww, C):
    # (B, H*W, 4*C) phase-blocked -> (B, (2H)*(2W), C) channels-last
    B = y.shape[0]
    y = y.reshape(B, hh, ww, 2, 2, C)            # [b, m, n, a, pb, c]
    y = jnp.transpose(y, (0, 1, 3, 2, 4, 5))     # [b, m, a, n, pb, c]
    return y.reshape(B, 4 * hh * ww, C)


def _phase_to_channels_first(y, hh, ww, C):
    # (B, H*W, 4*C) phase-blocked -> (B, C, (2H)*(2W)) channels-first
    B = y.shape[0]
    y = y.reshape(B, hh, ww, 2, 2, C)
    y = jnp.transpose(y, (0, 5, 1, 3, 2, 4))     # [b, c, m, a, n, pb]
    return y.reshape(B, C, 4 * hh * ww)


def _phase_cf_to_nchw(y, hh, ww, C):
    # (B, 4*C, H*W) phase-blocked channels-first -> (B, C, 2H, 2W) NCHW
    B = y.shape[0]
    y = y.reshape(B, 2, 2, C, hh, ww)            # [b, a, pb, c, m, n]
    y = jnp.transpose(y, (0, 3, 4, 1, 5, 2))     # [b, c, m, a, n, pb]
    return y.reshape(B, C, 2 * hh, 2 * ww)


# ----------------------------------------------------------------------------
# Module forward
# ----------------------------------------------------------------------------
def patch_inflated_forward(x, params, *, input_resolution, patch_size,
                           conv_dtype=jnp.float32):
    """x: (B, L=H*W, C=embed_dim) -> NCHW output, matching the PyTorch module.

    conv_dtype=jnp.bfloat16 runs the MXU matmuls with bf16 operands
    (f32 accumulation, f32 GroupNorm statistics) — the v6e/v7x fast path.
    """
    H, W = input_resolution
    B, L, C = x.shape
    assert L == H * W, "input feature has wrong size"
    assert H % 2 == 0 and W % 2 == 0, f"x size ({H}*{W}) are not even."

    h = x.astype(jnp.float32)                     # (B, L, C) channels-last
    blocks = params["blocks"] if patch_size > 2 else []
    curH, curW = H, W
    channels_first = False
    for i, blk in enumerate(blocks):
        y = convt_gn_lrelu_2x(h, blk["w"], blk["b"], blk["gn_w"], blk["gn_b"],
                              spatial_hw=(curH, curW), conv_dtype=conv_dtype)
        if i + 1 < len(blocks):
            h = _phase_to_channels_last(y, curH, curW, C)
        else:
            h = _phase_to_channels_first(y, curH, curW, C)  # for the final conv
            channels_first = True
        curH, curW = 2 * curH, 2 * curW
    if not channels_first:
        h = jnp.transpose(h, (0, 2, 1))           # (B, C, L) for the final conv

    y = convt_final_2x(h, params["conv_w"], params["conv_b"],
                       spatial_hw=(curH, curW), conv_dtype=conv_dtype)
    in_chans = params["conv_w"].shape[1]
    return _phase_cf_to_nchw(y, curH, curW, in_chans)


# ----------------------------------------------------------------------------
# Independent pure-JAX reference (dilate + pad + flipped 3x3 correlation).
# ----------------------------------------------------------------------------
def _ref_convt(x, w_pt, b_pt):
    B, H, W, Cin = x.shape
    Cout = w_pt.shape[1]
    xd = jnp.zeros((B, 2 * H - 1, 2 * W - 1, Cin), x.dtype)
    xd = xd.at[:, ::2, ::2, :].set(x)
    xp = jnp.pad(xd, ((0, 0), (1, 2), (1, 2), (0, 0)))
    w = jnp.transpose(w_pt, (2, 3, 0, 1))[::-1, ::-1, :, :]
    Ho, Wo = xp.shape[1] - 2, xp.shape[2] - 2
    acc = jnp.zeros((B, Ho, Wo, Cout), jnp.float32)
    for dy in range(3):
        for dx in range(3):
            acc = acc + jnp.einsum("bhwc,co->bhwo",
                                   xp[:, dy:dy + Ho, dx:dx + Wo, :], w[dy, dx])
    return acc + b_pt[None, None, None, :]


def _ref_gn_lrelu(x, gamma, beta, groups=16):
    B, H, W, C = x.shape
    cg = C // groups
    xg = x.reshape(B, H, W, groups, cg)
    mean = xg.mean(axis=(1, 2, 4), keepdims=True)
    var = ((xg - mean) ** 2).mean(axis=(1, 2, 4), keepdims=True)
    y = ((xg - mean) / jnp.sqrt(var + 1e-5)).reshape(B, H, W, C)
    y = y * gamma[None, None, None, :] + beta[None, None, None, :]
    return jnp.where(y >= 0, y, 0.2 * y)


def _ref_forward(x, params, input_resolution, patch_size):
    H, W = input_resolution
    B, L, C = x.shape
    h = x.reshape(B, H, W, C).astype(jnp.float32)
    if patch_size > 2:
        for blk in params["blocks"]:
            h = _ref_convt(h, blk["w"], blk["b"])
            h = _ref_gn_lrelu(h, blk["gn_w"], blk["gn_b"])
    h = _ref_convt(h, params["conv_w"], params["conv_b"])
    return jnp.transpose(h, (0, 3, 1, 2))


# ----------------------------------------------------------------------------
# Main
# ----------------------------------------------------------------------------
if __name__ == "__main__":
    B = 2
    H = W = 8
    embed_dim = 32          # divisible by 16 (GroupNorm groups)
    in_chans = 4
    patch_size = 4          # -> one (ConvT + GN + LeakyReLU) block + final ConvT
    input_resolution = (H, W)

    key = jax.random.PRNGKey(0)
    k_x, k_w1, k_b1, k_gw, k_gb, k_w2, k_b2 = jax.random.split(key, 7)

    x = jax.random.normal(k_x, (B, H * W, embed_dim), jnp.float32)

    params = {
        "blocks": [
            {
                "w": 0.1 * jax.random.normal(k_w1, (embed_dim, embed_dim, 3, 3), jnp.float32),
                "b": 0.05 * jax.random.normal(k_b1, (embed_dim,), jnp.float32),
                "gn_w": 1.0 + 0.1 * jax.random.normal(k_gw, (embed_dim,), jnp.float32),
                "gn_b": 0.1 * jax.random.normal(k_gb, (embed_dim,), jnp.float32),
            }
        ],
        "conv_w": 0.1 * jax.random.normal(k_w2, (embed_dim, in_chans, 3, 3), jnp.float32),
        "conv_b": 0.05 * jax.random.normal(k_b2, (in_chans,), jnp.float32),
    }

    ref = _ref_forward(x, params, input_resolution, patch_size)

    # Exact-semantics path (f32 MXU operands).
    fwd32 = jax.jit(functools.partial(
        patch_inflated_forward, input_resolution=input_resolution,
        patch_size=patch_size, conv_dtype=jnp.float32))
    out32 = jax.block_until_ready(fwd32(x, params))
    assert out32.shape == (B, in_chans, 4 * H, 4 * W), out32.shape
    assert jnp.allclose(out32, ref, atol=2e-4, rtol=2e-4), \
        float(jnp.max(jnp.abs(out32 - ref)))

    # bf16 MXU-operand path (v6e/v7x fast path); f32 accumulation + f32 GN stats.
    fwd16 = jax.jit(functools.partial(
        patch_inflated_forward, input_resolution=input_resolution,
        patch_size=patch_size, conv_dtype=jnp.bfloat16))
    out16 = jax.block_until_ready(fwd16(x, params))
    assert out16.shape == (B, in_chans, 4 * H, 4 * W), out16.shape
    assert float(jnp.max(jnp.abs(out16 - ref))) < 1e-1

    print("KERNEL_OK")
</pallas_src>

<mosaic_0001>
module attributes {stable_mosaic.version = 11 : i64} {
  func.func @_convt_gn_lrelu_kernel(%arg0: i32, %arg1: memref<1x73x32xf32, #tpu.memory_space<vmem>>, %arg2: memref<128x128xf32, #tpu.memory_space<vmem>>, %arg3: memref<1x128xf32, #tpu.memory_space<vmem>>, %arg4: memref<128x128xf32, #tpu.memory_space<vmem>>, %arg5: memref<1x128xf32, #tpu.memory_space<vmem>>, %arg6: memref<1x128xf32, #tpu.memory_space<vmem>>, %arg7: memref<1x64x128xf32, #tpu.memory_space<vmem>>, %arg8: memref<64x128xf32, #tpu.memory_space<vmem>>) attributes {dimension_semantics = [#tpu.dimension_semantics<parallel>], iteration_bounds = array<i64: 2>, scalar_prefetch = 0 : i64, scratch_operands = 1 : i64, tpu.core_type = #tpu.core_type<tc>, window_params = [{transform_indices = @transform_0, window_bounds = array<i64: 1, 73, 32>}, {pipeline_mode = #tpu.pipeline_mode<synchronous>, transform_indices = @transform_1, window_bounds = array<i64: 128, 128>}, {pipeline_mode = #tpu.pipeline_mode<synchronous>, transform_indices = @transform_2, window_bounds = array<i64: 1, 128>}, {pipeline_mode = #tpu.pipeline_mode<synchronous>, transform_indices = @transform_3, window_bounds = array<i64: 128, 128>}, {pipeline_mode = #tpu.pipeline_mode<synchronous>, transform_indices = @transform_4, window_bounds = array<i64: 1, 128>}, {pipeline_mode = #tpu.pipeline_mode<synchronous>, transform_indices = @transform_5, window_bounds = array<i64: 1, 128>}, {transform_indices = @transform_6, window_bounds = array<i64: 1, 64, 128>}]} {
    %c0 = arith.constant 0 : index
    %c0_0 = arith.constant 0 : index
    %c0_1 = arith.constant 0 : index
    %0 = vector.load %arg1[%c0, %c0_0, %c0_1] : memref<1x73x32xf32, #tpu.memory_space<vmem>>, vector<1x73x32xf32>
    %1 = vector.shape_cast %0 : vector<1x73x32xf32> to vector<73x32xf32>
    %2 = tpu.iota {dimensions = array<i32: 0>} : vector<64x1xi32>
    %c8_i32 = arith.constant 8 : i32
    %c0_i32 = arith.constant 0 : i32
    %3 = arith.cmpi eq, %c8_i32, %c0_i32 : i32
    %c1_i32 = arith.constant 1 : i32
    %4 = arith.select %3, %c1_i32, %c8_i32 : i32
    %5 = vector.broadcast %4 : i32 to vector<64x1xi32>
    %6 = arith.remsi %2, %5 : vector<64x1xi32>
    %c0_i32_2 = arith.constant 0 : i32
    %7 = vector.broadcast %c0_i32_2 : i32 to vector<64x1xi32>
    %8 = arith.cmpi ne, %6, %7 : vector<64x1xi32>
    %c0_i32_3 = arith.constant 0 : i32
    %9 = vector.broadcast %c0_i32_3 : i32 to vector<64x1xi32>
    %10 = arith.cmpi slt, %6, %9 : vector<64x1xi32>
    %c0_i32_4 = arith.constant 0 : i32
    %11 = arith.cmpi slt, %4, %c0_i32_4 : i32
    %12 = vector.broadcast %11 : i1 to vector<64x1xi1>
    %13 = vector.broadcast %12 : vector<64x1xi1> to vector<64x1xi1>
    %14 = arith.xori %10, %13 : vector<64x1xi1>
    %15 = arith.andi %14, %8 : vector<64x1xi1>
    %16 = vector.broadcast %4 : i32 to vector<64x1xi32>
    %17 = arith.addi %6, %16 : vector<64x1xi32>
    %18 = arith.select %15, %17, %6 : vector<64x1xi1>, vector<64x1xi32>
    %c7_i32 = arith.constant 7 : i32
    %19 = vector.broadcast %c7_i32 : i32 to vector<64x1xi32>
    %20 = arith.cmpi eq, %18, %19 : vector<64x1xi32>
    %c56_i32 = arith.constant 56 : i32
    %21 = vector.broadcast %c56_i32 : i32 to vector<64x1xi32>
    %22 = arith.cmpi sge, %2, %21 : vector<64x1xi32>
    %23 = vector.extract_strided_slice %1 {offsets = [0, 0], sizes = [64, 32], strides = [1, 1]} : vector<73x32xf32> to vector<64x32xf32>
    %c0_5 = arith.constant 0 : index
    %c0_6 = arith.constant 0 : index
    %24 = vector.load %arg8[%c0_5, %c0_6] : memref<64x128xf32, #tpu.memory_space<vmem>>, vector<64x32xf32>
    tpu.vector_store %arg8[%c0_5, %c0_6], %23 {strides = array<i32>} : memref<64x128xf32, #tpu.memory_space<vmem>>, vector<64x32xf32>,
    %25 = vector.extract_strided_slice %1 {offsets = [1, 0], sizes = [64, 32], strides = [1, 1]} : vector<73x32xf32> to vector<64x32xf32>
    %cst = arith.constant 0.000000e+00 : f32
    %26 = vector.shape_cast %20 : vector<64x1xi1> to vector<64x1xi1>
    %27 = vector.broadcast %26 : vector<64x1xi1> to vector<64x32xi1>
    %28 = vector.broadcast %cst : f32 to vector<64x32xf32>
    %29 = arith.select %27, %28, %25 : vector<64x32xi1>, vector<64x32xf32>
    %c0_7 = arith.constant 0 : index
    %c32 = arith.constant 32 : index
    %30 = vector.load %arg8[%c0_7, %c32] : memref<64x128xf32, #tpu.memory_space<vmem>>, vector<64x32xf32>
    tpu.vector_store %arg8[%c0_7, %c32], %29 {strides = array<i32>} : memref<64x128xf32, #tpu.memory_space<vmem>>, vector<64x32xf32>,
    %31 = vector.extract_strided_slice %1 {offsets = [8, 0], sizes = [64, 32], strides = [1, 1]} : vector<73x32xf32> to vector<64x32xf32>
    %cst_8 = arith.constant 0.000000e+00 : f32
    %32 = vector.shape_cast %22 : vector<64x1xi1> to vector<64x1xi1>
    %33 = vector.broadcast %32 : vector<64x1xi1> to vector<64x32xi1>
    %34 = vector.broadcast %cst_8 : f32 to vector<64x32xf32>
    %35 = arith.select %33, %34, %31 : vector<64x32xi1>, vector<64x32xf32>
    %c0_9 = arith.constant 0 : index
    %c64 = arith.constant 64 : index
    %36 = vector.load %arg8[%c0_9, %c64] : memref<64x128xf32, #tpu.memory_space<vmem>>, vector<64x32xf32>
    tpu.vector_store %arg8[%c0_9, %c64], %35 {strides = array<i32>} : memref<64x128xf32, #tpu.memory_space<vmem>>, vector<64x32xf32>,
    %37 = arith.ori %20, %22 : vector<64x1xi1>
    %38 = vector.extract_strided_slice %1 {offsets = [9, 0], sizes = [64, 32], strides = [1, 1]} : vector<73x32xf32> to vector<64x32xf32>
    %cst_10 = arith.constant 0.000000e+00 : f32
    %39 = vector.shape_cast %37 : vector<64x1xi1> to vector<64x1xi1>
    %40 = vector.broadcast %39 : vector<64x1xi1> to vector<64x32xi1>
    %41 = vector.broadcast %cst_10 : f32 to vector<64x32xf32>
    %42 = arith.select %40, %41, %38 : vector<64x32xi1>, vector<64x32xf32>
    %c0_11 = arith.constant 0 : index
    %c96 = arith.constant 96 : index
    %43 = vector.load %arg8[%c0_11, %c96] : memref<64x128xf32, #tpu.memory_space<vmem>>, vector<64x32xf32>
    tpu.vector_store %arg8[%c0_11, %c96], %42 {strides = array<i32>} : memref<64x128xf32, #tpu.memory_space<vmem>>, vector<64x32xf32>,
    %c0_12 = arith.constant 0 : index
    %c0_13 = arith.constant 0 : index
    %44 = vector.load %arg8[%c0_12, %c0_13] : memref<64x128xf32, #tpu.memory_space<vmem>>, vector<64x128xf32>
    %c0_14 = arith.constant 0 : index
    %c0_15 = arith.constant 0 : index
    %45 = vector.load %arg2[%c0_14, %c0_15] : memref<128x128xf32, #tpu.memory_space<vmem>>, vector<128x128xf32>
    %cst_16 = arith.constant dense<0.000000e+00> : vector<64x128xf32>
    %46 = tpu.matmul %44, %45, %cst_16 {dimension_numbers = #tpu.dot_dimension_numbers<[1], [0], [0], [1], [0, 0, 1, 1], [], []>} : vector<64x128xf32>, vector<128x128xf32>, vector<64x128xf32> -> vector<64x128xf32>
    %c0_17 = arith.constant 0 : index
    %c0_18 = arith.constant 0 : index
    %47 = vector.load %arg3[%c0_17, %c0_18] : memref<1x128xf32, #tpu.memory_space<vmem>>, vector<1x128xf32>
    %48 = vector.broadcast %47 : vector<1x128xf32> to vector<64x128xf32>
    %49 = arith.addf %46, %48 : vector<64x128xf32>
    %cst_19 = arith.constant dense<0.000000e+00> : vector<128xf32>
    %50 = vector.multi_reduction <add>, %49, %cst_19 [0] : vector<64x128xf32> to vector<128xf32>
    %51 = vector.shape_cast %50 : vector<128xf32> to vector<1x128xf32>
    %c0_20 = arith.constant 0 : index
    %c0_21 = arith.constant 0 : index
    %52 = vector.load %arg4[%c0_20, %c0_21] : memref<128x128xf32, #tpu.memory_space<vmem>>, vector<128x128xf32>
    %cst_22 = arith.constant dense<0.000000e+00> : vector<1x128xf32>
    %53 = tpu.matmul %51, %52, %cst_22 {dimension_numbers = #tpu.dot_dimension_numbers<[1], [0], [0], [1], [0, 0, 1, 1], [], []>} : vector<1x128xf32>, vector<128x128xf32>, vector<1x128xf32> -> vector<1x128xf32>
    %54 = vector.broadcast %53 : vector<1x128xf32> to vector<64x128xf32>
    %55 = arith.subf %49, %54 : vector<64x128xf32>
    %56 = arith.mulf %55, %55 : vector<64x128xf32>
    %cst_23 = arith.constant dense<0.000000e+00> : vector<128xf32>
    %57 = vector.multi_reduction <add>, %56, %cst_23 [0] : vector<64x128xf32> to vector<128xf32>
    %58 = vector.shape_cast %57 : vector<128xf32> to vector<1x128xf32>
    %c0_24 = arith.constant 0 : index
    %c0_25 = arith.constant 0 : index
    %59 = vector.load %arg4[%c0_24, %c0_25] : memref<128x128xf32, #tpu.memory_space<vmem>>, vector<128x128xf32>
    %cst_26 = arith.constant dense<0.000000e+00> : vector<1x128xf32>
    %60 = tpu.matmul %58, %59, %cst_26 {dimension_numbers = #tpu.dot_dimension_numbers<[1], [0], [0], [1], [0, 0, 1, 1], [], []>} : vector<1x128xf32>, vector<128x128xf32>, vector<1x128xf32> -> vector<1x128xf32>
    %cst_27 = arith.constant 9.99999974E-6 : f32
    %61 = vector.broadcast %cst_27 : f32 to vector<1x128xf32>
    %62 = arith.addf %60, %61 : vector<1x128xf32>
    %63 = math.rsqrt %62 : vector<1x128xf32>
    %64 = vector.broadcast %63 : vector<1x128xf32> to vector<64x128xf32>
    %65 = arith.mulf %55, %64 : vector<64x128xf32>
    %c0_28 = arith.constant 0 : index
    %c0_29 = arith.constant 0 : index
    %66 = vector.load %arg5[%c0_28, %c0_29] : memref<1x128xf32, #tpu.memory_space<vmem>>, vector<1x128xf32>
    %67 = vector.broadcast %66 : vector<1x128xf32> to vector<64x128xf32>
    %68 = arith.mulf %65, %67 : vector<64x128xf32>
    %c0_30 = arith.constant 0 : index
    %c0_31 = arith.constant 0 : index
    %69 = vector.load %arg6[%c0_30, %c0_31] : memref<1x128xf32, #tpu.memory_space<vmem>>, vector<1x128xf32>
    %70 = vector.broadcast %69 : vector<1x128xf32> to vector<64x128xf32>
    %71 = arith.addf %68, %70 : vector<64x128xf32>
    %cst_32 = arith.constant 0.000000e+00 : f32
    %72 = vector.broadcast %cst_32 : f32 to vector<64x128xf32>
    %73 = arith.cmpf oge, %71, %72 : vector<64x128xf32>
    %cst_33 = arith.constant 2.000000e-01 : f32
    %74 = vector.broadcast %cst_33 : f32 to vector<64x128xf32>
    %75 = arith.mulf %74, %71 : vector<64x128xf32>
    %76 = arith.select %73, %71, %75 : vector<64x128xi1>, vector<64x128xf32>
    %c0_34 = arith.constant 0 : index
    %c0_35 = arith.constant 0 : index
    %c0_36 = arith.constant 0 : index
    %77 = vector.load %arg7[%c0_34, %c0_35, %c0_36] : memref<1x64x128xf32, #tpu.memory_space<vmem>>, vector<1x64x128xf32>
    %78 = vector.shape_cast %77 : vector<1x64x128xf32> to vector<64x128xf32>
    %79 = vector.shape_cast %76 : vector<64x128xf32> to vector<1x64x128xf32>
    tpu.vector_store %arg7[%c0_34, %c0_35, %c0_36], %79 {strides = array<i32>} : memref<1x64x128xf32, #tpu.memory_space<vmem>>, vector<1x64x128xf32>,
    return
  }
  func.func @transform_0(%arg0: i32) -> (i32, i32, i32) {
    %c0_i32 = arith.constant 0 : i32
    %c0_i32_0 = arith.constant 0 : i32
    %c0_i32_1 = arith.constant 0 : i32
    return %arg0, %c0_i32, %c0_i32_0 : i32, i32, i32
  }
  func.func @transform_1(%arg0: i32) -> (i32, i32) {
    %c0_i32 = arith.constant 0 : i32
    %c0_i32_0 = arith.constant 0 : i32
    %c0_i32_1 = arith.constant 0 : i32
    return %c0_i32, %c0_i32_0 : i32, i32
  }
  func.func @transform_2(%arg0: i32) -> (i32, i32) {
    %c0_i32 = arith.constant 0 : i32
    %c0_i32_0 = arith.constant 0 : i32
    %c0_i32_1 = arith.constant 0 : i32
    return %c0_i32, %c0_i32_0 : i32, i32
  }
  func.func @transform_3(%arg0: i32) -> (i32, i32) {
    %c0_i32 = arith.constant 0 : i32
    %c0_i32_0 = arith.constant 0 : i32
    %c0_i32_1 = arith.constant 0 : i32
    return %c0_i32, %c0_i32_0 : i32, i32
  }
  func.func @transform_4(%arg0: i32) -> (i32, i32) {
    %c0_i32 = arith.constant 0 : i32
    %c0_i32_0 = arith.constant 0 : i32
    %c0_i32_1 = arith.constant 0 : i32
    return %c0_i32, %c0_i32_0 : i32, i32
  }
  func.func @transform_5(%arg0: i32) -> (i32, i32) {
    %c0_i32 = arith.constant 0 : i32
    %c0_i32_0 = arith.constant 0 : i32
    %c0_i32_1 = arith.constant 0 : i32
    return %c0_i32, %c0_i32_0 : i32, i32
  }
  func.func @transform_6(%arg0: i32) -> (i32, i32, i32) {
    %c0_i32 = arith.constant 0 : i32
    %c0_i32_0 = arith.constant 0 : i32
    %c0_i32_1 = arith.constant 0 : i32
    return %arg0, %c0_i32, %c0_i32_0 : i32, i32, i32
  }
}

module attributes {stable_mosaic.version = 11 : i64} {
  func.func @_convt_final_kernel(%arg0: i32, %arg1: memref<1x32x273xf32, #tpu.memory_space<vmem>>, %arg2: memref<16x128xf32, #tpu.memory_space<vmem>>, %arg3: memref<16x1xf32, #tpu.memory_space<vmem>>, %arg4: memref<1x16x256xf32, #tpu.memory_space<vmem>>, %arg5: memref<128x256xf32, #tpu.memory_space<vmem>>) attributes {dimension_semantics = [#tpu.dimension_semantics<parallel>], iteration_bounds = array<i64: 2>, scalar_prefetch = 0 : i64, scratch_operands = 1 : i64, tpu.core_type = #tpu.core_type<tc>, window_params = [{transform_indices = @transform_0, window_bounds = array<i64: 1, 32, 273>}, {pipeline_mode = #tpu.pipeline_mode<synchronous>, transform_indices = @transform_1, window_bounds = array<i64: 16, 128>}, {pipeline_mode = #tpu.pipeline_mode<synchronous>, transform_indices = @transform_2, window_bounds = array<i64: 16, 1>}, {transform_indices = @transform_3, window_bounds = array<i64: 1, 16, 256>}]} {
    %c0 = arith.constant 0 : index
    %c0_0 = arith.constant 0 : index
    %c0_1 = arith.constant 0 : index
    %0 = vector.load %arg1[%c0, %c0_0, %c0_1] : memref<1x32x273xf32, #tpu.memory_space<vmem>>, vector<1x32x273xf32>
    %1 = vector.shape_cast %0 : vector<1x32x273xf32> to vector<32x273xf32>
    %2 = tpu.iota {dimensions = array<i32: 1>} : vector<1x256xi32>
    %c16_i32 = arith.constant 16 : i32
    %c0_i32 = arith.constant 0 : i32
    %3 = arith.cmpi eq, %c16_i32, %c0_i32 : i32
    %c1_i32 = arith.constant 1 : i32
    %4 = arith.select %3, %c1_i32, %c16_i32 : i32
    %5 = vector.broadcast %4 : i32 to vector<1x256xi32>
    %6 = arith.remsi %2, %5 : vector<1x256xi32>
    %c0_i32_2 = arith.constant 0 : i32
    %7 = vector.broadcast %c0_i32_2 : i32 to vector<1x256xi32>
    %8 = arith.cmpi ne, %6, %7 : vector<1x256xi32>
    %c0_i32_3 = arith.constant 0 : i32
    %9 = vector.broadcast %c0_i32_3 : i32 to vector<1x256xi32>
    %10 = arith.cmpi slt, %6, %9 : vector<1x256xi32>
    %c0_i32_4 = arith.constant 0 : i32
    %11 = arith.cmpi slt, %4, %c0_i32_4 : i32
    %12 = vector.broadcast %11 : i1 to vector<1x256xi1>
    %13 = vector.broadcast %12 : vector<1x256xi1> to vector<1x256xi1>
    %14 = arith.xori %10, %13 : vector<1x256xi1>
    %15 = arith.andi %14, %8 : vector<1x256xi1>
    %16 = vector.broadcast %4 : i32 to vector<1x256xi32>
    %17 = arith.addi %6, %16 : vector<1x256xi32>
    %18 = arith.select %15, %17, %6 : vector<1x256xi1>, vector<1x256xi32>
    %c15_i32 = arith.constant 15 : i32
    %19 = vector.broadcast %c15_i32 : i32 to vector<1x256xi32>
    %20 = arith.cmpi eq, %18, %19 : vector<1x256xi32>
    %c240_i32 = arith.constant 240 : i32
    %21 = vector.broadcast %c240_i32 : i32 to vector<1x256xi32>
    %22 = arith.cmpi sge, %2, %21 : vector<1x256xi32>
    %23 = vector.extract_strided_slice %1 {offsets = [0, 0], sizes = [32, 256], strides = [1, 1]} : vector<32x273xf32> to vector<32x256xf32>
    %c0_5 = arith.constant 0 : index
    %c0_6 = arith.constant 0 : index
    %24 = vector.load %arg5[%c0_5, %c0_6] : memref<128x256xf32, #tpu.memory_space<vmem>>, vector<32x256xf32>
    tpu.vector_store %arg5[%c0_5, %c0_6], %23 {strides = array<i32>} : memref<128x256xf32, #tpu.memory_space<vmem>>, vector<32x256xf32>,
    %25 = vector.extract_strided_slice %1 {offsets = [0, 1], sizes = [32, 256], strides = [1, 1]} : vector<32x273xf32> to vector<32x256xf32>
    %cst = arith.constant 0.000000e+00 : f32
    %26 = vector.shape_cast %20 : vector<1x256xi1> to vector<1x256xi1>
    %27 = vector.broadcast %26 : vector<1x256xi1> to vector<32x256xi1>
    %28 = vector.broadcast %cst : f32 to vector<32x256xf32>
    %29 = arith.select %27, %28, %25 : vector<32x256xi1>, vector<32x256xf32>
    %c32 = arith.constant 32 : index
    %c0_7 = arith.constant 0 : index
    %30 = vector.load %arg5[%c32, %c0_7] : memref<128x256xf32, #tpu.memory_space<vmem>>, vector<32x256xf32>
    tpu.vector_store %arg5[%c32, %c0_7], %29 {strides = array<i32>} : memref<128x256xf32, #tpu.memory_space<vmem>>, vector<32x256xf32>,
    %31 = vector.extract_strided_slice %1 {offsets = [0, 16], sizes = [32, 256], strides = [1, 1]} : vector<32x273xf32> to vector<32x256xf32>
    %cst_8 = arith.constant 0.000000e+00 : f32
    %32 = vector.shape_cast %22 : vector<1x256xi1> to vector<1x256xi1>
    %33 = vector.broadcast %32 : vector<1x256xi1> to vector<32x256xi1>
    %34 = vector.broadcast %cst_8 : f32 to vector<32x256xf32>
    %35 = arith.select %33, %34, %31 : vector<32x256xi1>, vector<32x256xf32>
    %c64 = arith.constant 64 : index
    %c0_9 = arith.constant 0 : index
    %36 = vector.load %arg5[%c64, %c0_9] : memref<128x256xf32, #tpu.memory_space<vmem>>, vector<32x256xf32>
    tpu.vector_store %arg5[%c64, %c0_9], %35 {strides = array<i32>} : memref<128x256xf32, #tpu.memory_space<vmem>>, vector<32x256xf32>,
    %37 = arith.ori %20, %22 : vector<1x256xi1>
    %38 = vector.extract_strided_slice %1 {offsets = [0, 17], sizes = [32, 256], strides = [1, 1]} : vector<32x273xf32> to vector<32x256xf32>
    %cst_10 = arith.constant 0.000000e+00 : f32
    %39 = vector.shape_cast %37 : vector<1x256xi1> to vector<1x256xi1>
    %40 = vector.broadcast %39 : vector<1x256xi1> to vector<32x256xi1>
    %41 = vector.broadcast %cst_10 : f32 to vector<32x256xf32>
    %42 = arith.select %40, %41, %38 : vector<32x256xi1>, vector<32x256xf32>
    %c96 = arith.constant 96 : index
    %c0_11 = arith.constant 0 : index
    %43 = vector.load %arg5[%c96, %c0_11] : memref<128x256xf32, #tpu.memory_space<vmem>>, vector<32x256xf32>
    tpu.vector_store %arg5[%c96, %c0_11], %42 {strides = array<i32>} : memref<128x256xf32, #tpu.memory_space<vmem>>, vector<32x256xf32>,
    %c0_12 = arith.constant 0 : index
    %c0_13 = arith.constant 0 : index
    %44 = vector.load %arg2[%c0_12, %c0_13] : memref<16x128xf32, #tpu.memory_space<vmem>>, vector<16x128xf32>
    %c0_14 = arith.constant 0 : index
    %c0_15 = arith.constant 0 : index
    %45 = vector.load %arg5[%c0_14, %c0_15] : memref<128x256xf32, #tpu.memory_space<vmem>>, vector<128x256xf32>
    %cst_16 = arith.constant dense<0.000000e+00> : vector<16x256xf32>
    %46 = tpu.matmul %44, %45, %cst_16 {dimension_numbers = #tpu.dot_dimension_numbers<[1], [0], [0], [1], [0, 0, 1, 1], [], []>} : vector<16x128xf32>, vector<128x256xf32>, vector<16x256xf32> -> vector<16x256xf32>
    %c0_17 = arith.constant 0 : index
    %c0_18 = arith.constant 0 : index
    %47 = vector.load %arg3[%c0_17, %c0_18] : memref<16x1xf32, #tpu.memory_space<vmem>>, vector<16x1xf32>
    %48 = vector.broadcast %47 : vector<16x1xf32> to vector<16x256xf32>
    %49 = arith.addf %46, %48 : vector<16x256xf32>
    %c0_19 = arith.constant 0 : index
    %c0_20 = arith.constant 0 : index
    %c0_21 = arith.constant 0 : index
    %50 = vector.load %arg4[%c0_19, %c0_20, %c0_21] : memref<1x16x256xf32, #tpu.memory_space<vmem>>, vector<1x16x256xf32>
    %51 = vector.shape_cast %50 : vector<1x16x256xf32> to vector<16x256xf32>
    %52 = vector.shape_cast %49 : vector<16x256xf32> to vector<1x16x256xf32>
    tpu.vector_store %arg4[%c0_19, %c0_20, %c0_21], %52 {strides = array<i32>} : memref<1x16x256xf32, #tpu.memory_space<vmem>>, vector<1x16x256xf32>,
    return
  }
  func.func @transform_0(%arg0: i32) -> (i32, i32, i32) {
    %c0_i32 = arith.constant 0 : i32
    %c0_i32_0 = arith.constant 0 : i32
    %c0_i32_1 = arith.constant 0 : i32
    return %arg0, %c0_i32, %c0_i32_0 : i32, i32, i32
  }
  func.func @transform_1(%arg0: i32) -> (i32, i32) {
    %c0_i32 = arith.constant 0 : i32
    %c0_i32_0 = arith.constant 0 : i32
    %c0_i32_1 = arith.constant 0 : i32
    return %c0_i32, %c0_i32_0 : i32, i32
  }
  func.func @transform_2(%arg0: i32) -> (i32, i32) {
    %c0_i32 = arith.constant 0 : i32
    %c0_i32_0 = arith.constant 0 : i32
    %c0_i32_1 = arith.constant 0 : i32
    return %c0_i32, %c0_i32_0 : i32, i32
  }
  func.func @transform_3(%arg0: i32) -> (i32, i32, i32) {
    %c0_i32 = arith.constant 0 : i32
    %c0_i32_0 = arith.constant 0 : i32
    %c0_i32_1 = arith.constant 0 : i32
    return %arg0, %c0_i32, %c0_i32_0 : i32, i32, i32
  }
}

</mosaic_0001>

<bundles_post_ra>
// kernel: tile.23
= control target key start
LH: loop header
LB: loop body
LE: loop exit
PB: predicated region body
PF: predicated region fallthrough
CT: control target
= control target key end

     0   :  { %2 = vsyncpa [#allocation1], 0  ;;  %s44_s6 = smov [#allocation0]   ;;  %s70_s0 = inlined_call_operand.hbm [shape: f32[32], index: 0, kind: input, shape index: {}]   ;;  %s71_s1 = inlined_call_operand.vmem [shape: f32[4,32], index: 1, kind: output, shape index: {}]  }
   0x1   :  { %s9_s7 = sshll.u32 %s44_s6, 4  ;;  %s20_s10 = scalar_lea.hbm %s70_s0, 16  ;;  %s10_s7 = int_to_ptr.vmem [resolvable:$true] %s9_s7 }
   0x2   :  { %p21_p0 = scmp.ne.s32.totalorder %s70_s0, %s20_s10  ;;  %p24_p1 = scmp.lt.u32.totalorder %s20_s10, %s70_s0 }
   0x4   :  { %p26_p2 = pnand %p24_p1, %p21_p0 }
   0x6   :  { %29 = shalt.err (!%p26_p2)
}
   0x7   :  { %s30_s15 = scalar_lea.vmem %s10_s7, 16  ;;  %s34_s16 = scalar_lea.vmem %s10_s7, 32 }
   0x8   :  { %p31_p3 = scmp.ne.s32.totalorder %s10_s7, %s30_s15  ;;  %p35_p4 = scmp.lt.s32.totalorder %s10_s7, %s10_s7 }
   0x9   :  { %p36_p5 = scmp.lt.s32.totalorder %s34_s16, %s30_s15 }
   0xb   :  { %p37_p6 = por %p36_p5, %p35_p4 }
   0xd   :  { %p38_p7 = pnand %p37_p6, %p31_p3 }
   0xf   :  { %41 = shalt.err (!%p38_p7)
}
  0x10   :  { %12 = dma.hbm_to_vmem [thread:$0]  %s70_s0, 16, %s10_s7, [#allocation1]  }
  0x11   :  { %42 = dma.done.wait [#allocation1], 16  }
  0x12   :  { %43 = vsyncadd [#allocation1], 4294967280  ;;  %v16_v0 = vld [vmem:[#allocation0] ss:$0 sm:$0xff] }
  0x13   :  { %17 = vst [vmem:[%s71_s1] sm:$0xf] %v16_v0 }
  0x14   :  { %18 = vsyncpa [#allocation1], 1 }

// kernel: tile.38
= control target key start
LH: loop header
LB: loop body
LE: loop exit
PB: predicated region body
PF: predicated region fallthrough
CT: control target
= control target key end

     0   :  { %s22_s0 = inlined_call_operand.vmem [shape: f32[4], index: 0, kind: input, shape index: {}]   ;;  %s23_s1 = inlined_call_operand.vmem [shape: f32[4,4], index: 1, kind: output, shape index: {}]  }
   0x1   :  { %v4_v0 = vld [vmem:[%s22_s0] ss:$0 sm:$0xff] }
   0x2   :  { %5 = vst [vmem:[%s23_s1] sm:$0xf] %v4_v0 }

// kernel: tile.24
= control target key start
LH: loop header
LB: loop body
LE: loop exit
PB: predicated region body
PF: predicated region fallthrough
CT: control target
= control target key end

     0   :  { %vm7_vm0 = vcmask 261120   ;;  %s37_s8 = smov 32   ;;  %s38_s9 = smov 64   ;;  %vm13_vm1 = vcmask 1048320   ;;  %vm19_vm2 = vcmask 785920   ;;  %vm25_vm3 = vcmask 523520   ;;  %s55_s0 = inlined_call_operand.vmem [shape: f32[4,32], index: 0, kind: input, shape index: {}]   ;;  %s56_s1 = inlined_call_operand.vmem [shape: f32[1,128], index: 1, kind: output, shape index: {}]  }
   0x1   :  { %v4_v0 = vld [vmem:[%s55_s0] sm:$0xf]  ;;  %s36_s0 = smov 96  }
   0x2   :  { %5 = vst [vmem:[#allocation1] sm:$0xf] %v4_v0 }
   0x9   :  { %v10_v1 = vld [vmem:[#allocation1 + $0x3] sm:$0x1]   ;;  %v22_v2 = vld [vmem:[#allocation1 + $0x1] sm:$0x1]   ;;  %v6_v3 = vld [vmem:[#allocation1] sm:$0x1]  }
   0xa   :  { %11 = vrot.lane.b32.xlu0 %v10_v1, %s36_s0  ;;  %23 = vrot.lane.b32.xlu1 %v22_v2, %s37_s8  ;;  %v16_v4 = vld [vmem:[#allocation1 + $0x2] sm:$0x1]   ;;  %8 = vst.msk [vmem:[#allocation0] sm:$0x1] %vm7_vm0, %v6_v3  }
   0xe   :  { %17 = vrot.lane.b32.xlu0 %v16_v4, %s38_s9 }
  0x7c   :  { %v12_v5 = vpop.permute.xlu0 %11   ;;  %v24_v6 = vpop.permute.xlu1 %23  }
  0x7d   :  { %14 = vst.msk [vmem:[#allocation0] sm:$0x1] %vm13_vm1, %v12_v5  }
  0x80   :  { %v18_v7 = vpop.permute.xlu0 %17  }
  0x81   :  { %20 = vst.msk [vmem:[#allocation0] sm:$0x1] %vm19_vm2, %v18_v7  }
  0x82   :  { %26 = vst.msk [vmem:[#allocation0] sm:$0x1] %vm25_vm3, %v24_v6  }
  0x89   :  { %v30_v8 = vld [vmem:[#allocation0] sm:$0x1] }
  0x8a   :  { %32 = vst [vmem:[%s56_s1] sm:$0x1] %v30_v8 }

// kernel: tile.0
= control target key start
LH: loop header
LB: loop body
LE: loop exit
PB: predicated region body
PF: predicated region fallthrough
CT: control target
= control target key end

     0   :  { %s34_s8 = smov 125   ;;  %vm7_vm0 = vcmask 7168   ;;  %s35_s11 = smov 126   ;;  %s61_s0 = inlined_call_operand.vmem [shape: f32[4,4], index: 0, kind: input, shape index: {}]   ;;  %s62_s1 = inlined_call_operand.vmem [shape: f32[16,1], index: 1, kind: output, shape index: {}]  }
   0x1   :  { %v4_v0 = vld [vmem:[%s61_s0] sm:$0xf]  ;;  %s33_s0 = smov 127  }
   0x2   :  { %5 = vst [vmem:[#allocation0] sm:$0xf] %v4_v0 }
   0x9   :  { %v9_v1 = vld [vmem:[#allocation0] sm:$0xf]  }
   0xa   :  { %v21_v2 = vld [vmem:[#allocation0] sm:$0xf]   ;;  %10 = vrot.lane.b32.xlu0 %v9_v1, %s33_s0 }
   0xb   :  { %22 = vrot.lane.b32.xlu1 %v21_v2, %s34_s8  ;;  %v6_v3 = vld [vmem:[#allocation0] sm:$0xf]  }
   0xc   :  { %v15_v4 = vld [vmem:[#allocation0] sm:$0xf]   ;;  %8 = vst.msk [vmem:[%s62_s1] ss:$4 sm:$0xf] %vm7_vm0, %v6_v3  }
   0xe   :  { %16 = vrot.lane.b32.xlu0 %v15_v4, %s35_s11 }
  0x7c   :  { %v11_v5 = vpop.permute.xlu0 %10  }
  0x7d   :  { %v23_v6 = vpop.permute.xlu1 %22   ;;  %27 = vst.msk [vmem:[%s62_s1 + $0x1] ss:$4 sm:$0xf] %vm7_vm0, %v11_v5  }
  0x7e   :  { %29 = vst.msk [vmem:[%s62_s1 + $0x3] ss:$4 sm:$0xf] %vm7_vm0, %v23_v6  }
  0x80   :  { %v17_v7 = vpop.permute.xlu0 %16  }
  0x81   :  { %28 = vst.msk [vmem:[%s62_s1 + $0x2] ss:$4 sm:$0xf] %vm7_vm0, %v17_v7  }

// kernel: patch_inflated_forward.3
= control target key start
LH: loop header
LB: loop body
LE: loop exit
PB: predicated region body
PF: predicated region fallthrough
CT: control target
= control target key end

     0   :  { %s850_s12 = smov 0   ;;  %s991_s0 = inlined_call_operand.vmem [shape: f32[2,32,273], index: 0, kind: input, shape index: {}]   ;;  %s992_s1 = inlined_call_operand.vmem [shape: f32[16,128], index: 1, kind: input, shape index: {}]   ;;  %s993_s2 = inlined_call_operand.vmem [shape: f32[16,1], index: 2, kind: input, shape index: {}]   ;;  %s994_s3 = inlined_call_operand.vmem [shape: f32[2,16,256], index: 3, kind: output, shape index: {}]  }
   0x1 LB: > { %s601_s13 = sadd.s32 4294967295, %s823_s12   ;;  %p605_p0 = scmp.ge.s32.totalorder %s823_s12, 1  ;;  %s823_s12 = sphi %s850_s12, %s13_s12  }
   0x2   : > { %p137_p1 = scmp.lt.s32.totalorder %s823_s12, 3 }
   0x4   : > { %p138_p2 = pnand %p605_p0, %p137_p1 }
   0x5   : > { %p161_p3 = scmp.lt.s32.totalorder (!%p138_p2), %s601_s13, 1  ;;  %v183_v0 = vlaneseq (!%p138_p2)  ;;  %s825_s18 = smov (!%p138_p2), 127   ;;  %v828_v25 = vmov (!%p138_p2), 0.0   ;;  %v829_v26 = vmov (!%p138_p2), 0   ;;  %v453_v27 = vld [vmem:[%s993_s2] sm:$0xff] (!%p138_p2)  ;;  %v454_v28 = vld [vmem:[%s993_s2 + $0x8] sm:$0xff] (!%p138_p2) }
   0x6   : > { %141 = sbr.rel (%p138_p2) target bundleno = 392 (0x188), region = 32  ;;  %s826_s19 = smov (!%p138_p2), 112   ;;  %529 = vmatprep.mubr.f32.mxu0 (!%p138_p2), %v828_v25  ;;  %535 = vmatprep.mubr.f32.mxu1 (!%p138_p2), %v828_v25  ;;  %vm262_vm1 = vcmask (!%p138_p2), 1039360   ;;  %vm323_vm7 = vcmask (!%p138_p2), 916480   ;;  %vm386_vm11 = vcmask (!%p138_p2), 908288  }
   0x7   : > { %v860_v1 = vand.u32 (!%p138_p2), 127, %v183_v0  ;;  %s827_s20 = smov (!%p138_p2), 111   ;;  %815 = vset.pattern.permute.xlu0 (!%p138_p2), %v829_v26  ;;  %816 = vset.pattern.permute.xlu1 (!%p138_p2), %v829_v26 }
   0x9   : > { %v190_v2 = vand.u32 (!%p138_p2), 15, %v860_v1  ;;  %v874_v29 = vadd.s32 (!%p138_p2), 128, %v860_v1 }
   0xb   : > { %v197_v30 = vand.u32 (!%p138_p2), 15, %v874_v29  ;;  %vm711_vm3 = vcmp.ne.s32.totalorder (!%p138_p2), %v190_v2, 15  ;;  %vm213_vm6 = vcmp.ge.s32.totalorder (!%p138_p2), %v874_v29, 240 }
   0xc   : > { %vm893_vm5 = vmpackc.low (!%p138_p2), %vm711_vm3, %vm711_vm3 }
   0xd   : > { %s1008_s13 = smov (!%p161_p3, %s601_s13), 1  ;;  %vm877_vm0 = vcmp.eq.s32.totalorder %v197_v30, 15  ;;  %vm628_vm8 = vmneg %vm213_vm6 }
   0xe   : > { %s710_s14 = smul.u32 96, %s1008_s13  ;;  %vm612_vm2 = vmneg %vm877_vm0  ;;  %s611_s29 = sshll.u32 %s1008_s13, 5 }
   0xf   : > { %vm889_vm4 = vmpackc.low %vm612_vm2, %vm612_vm2  ;;  %s170_s5 = scalar_lea.vmem %s994_s3, %s611_s29 }
  0x10   : > { %s165_s17 = scalar_lea.vmem %s991_s0, %s710_s14  ;;  %vm922_vm9 = vmpackc.low %vm628_vm8, %vm628_vm8 }
  0x11   : > { %v172_v3 = vld [vmem:[%s165_s17 + $0x8] sm:$0xff]  ;;  %v173_v4 = vld [vmem:[%s165_s17 + $0x10] sm:$0xff]  ;;  %v171_v5 = vld [vmem:[%s165_s17] sm:$0xff] }
  0x12   : > { %v725_v6 = vpack.i.bf16 %v173_v4, %v172_v3  ;;  %v174_v7 = vld [vmem:[%s165_s17 + $0x18] sm:$0xff]  ;;  %v175_v8 = vld [vmem:[%s165_s17 + $0x20] sm:$0xff]  ;;  %v176_v9 = vld [vmem:[%s165_s17 + $0x28] sm:$0xff] }
  0x13   : > { %v735_v10 = vpack.i.bf16 %v174_v7, %v171_v5  ;;  %v178_v11 = vld [vmem:[%s165_s17 + $0x38] sm:$0xff]  ;;  %v179_v12 = vld [vmem:[%s165_s17 + $0x40] sm:$0xff]  ;;  %v730_v13 = vpack.i.bf16 %v176_v9, %v175_v8  ;;  %v181_v15 = vld [vmem:[%s165_s17 + $0x50] sm:$0xff]  ;;  %v652_v19 = vpack.c.bf16 %v175_v8, %v172_v3  ;;  %v654_v20 = vpack.c.bf16 %v174_v7, %v171_v5 }
  0x14   : > { %726 = vrot.lane.b32.xlu0 %v725_v6, %s825_s18  ;;  %v740_v14 = vpack.i.bf16 %v179_v12, %v178_v11  ;;  %v182_v16 = vld [vmem:[%s165_s17 + $0x58] sm:$0xff]  ;;  %v177_v17 = vld [vmem:[%s165_s17 + $0x30] sm:$0xff]  ;;  %v180_v18 = vld [vmem:[%s165_s17 + $0x48] sm:$0xff]  ;;  %v656_v21 = vpack.c.bf16 %v181_v15, %v178_v11 }
  0x15   : > { %736 = vrot.lane.b32.xlu1 %v735_v10, %s825_s18  ;;  %v745_v22 = vpack.i.bf16 %v182_v16, %v181_v15  ;;  %653 = vmatprep.subr.bf16.mxu0 %v652_v19  ;;  %v750_v23 = vpack.i.bf16 %v180_v18, %v177_v17  ;;  %v658_v24 = vpack.c.bf16 %v180_v18, %v177_v17  ;;  %vm936_vm10 = vmor %vm877_vm0, %vm213_vm6 }
  0x16   : > { %694 = vmatprep.subr.bf16.mxu1 %v652_v19  ;;  %655 = vmatpush1.bf16.msra.mxu0 %v654_v20  ;;  %vm636_vm12 = vmneg %vm936_vm10 }
  0x17   : > { %702 = vmatpush1.bf16.msra.mxu1 %v654_v20  ;;  %657 = vmatprep.subr.bf16.mxu0 %v656_v21  ;;  %vm952_vm13 = vmpackc.low %vm636_vm12, %vm636_vm12 }
  0x18   : > { %731 = vrot.lane.b32.xlu0 %v730_v13, %s825_s18  ;;  %695 = vmatprep.subr.bf16.mxu1 %v656_v21 }
  0x19   : > { %741 = vrot.lane.b32.xlu1 %v740_v14, %s825_s18 }
  0x1a   : > { %659 = vmatpush1.bf16.msra.mxu0 %v658_v24 }
  0x1b   : > { %703 = vmatpush1.bf16.msra.mxu1 %v658_v24 }
  0x1c   : > { %746 = vrot.lane.b32.xlu0 %v745_v22, %s825_s18 }
  0x1d   : > { %751 = vrot.lane.b32.xlu1 %v750_v23, %s825_s18 }
  0x20   : > { %756 = vrot.lane.b32.xlu0 %v725_v6, %s826_s19 }
  0x21   : > { %761 = vrot.lane.b32.xlu1 %v730_v13, %s826_s19 }
  0x24   : > { %766 = vrot.lane.b32.xlu0 %v735_v10, %s826_s19 }
  0x25   : > { %771 = vrot.lane.b32.xlu1 %v740_v14, %s826_s19 }
  0x28   : > { %776 = vrot.lane.b32.xlu0 %v745_v22, %s826_s19 }
  0x29   : > { %781 = vrot.lane.b32.xlu1 %v750_v23, %s826_s19 }
  0x2c   : > { %786 = vrot.lane.b32.xlu0 %v725_v6, %s827_s20 }
  0x2d   : > { %791 = vrot.lane.b32.xlu1 %v730_v13, %s827_s20 }
  0x30   : > { %796 = vrot.lane.b32.xlu0 %v735_v10, %s827_s20 }
  0x31   : > { %801 = vrot.lane.b32.xlu1 %v740_v14, %s827_s20 }
  0x34   : > { %806 = vrot.lane.b32.xlu0 %v745_v22, %s827_s20 }
  0x35   : > { %811 = vrot.lane.b32.xlu1 %v750_v23, %s827_s20 }
  0x38   : > { %457 = vperm.xlu0 %815, %v453_v27  }
  0x39   : > { %462 = vperm.xlu1 %816, %v454_v28  }
  0x86   : > { %v727_v31 = vpop.permute.xlu0 %726 }
  0x87   : > { %v737_v32 = vpop.permute.xlu1 %736  ;;  %v729_v34 = vunpack.i.h.bf16 %v727_v31  ;;  %v728_v35 = vunpack.i.l.bf16 %v727_v31 }
  0x88   : > { %v738_v36 = vunpack.i.l.bf16 %v737_v32  ;;  %v739_v38 = vunpack.i.h.bf16 %v737_v32 }
  0x89   : > { %v264_v42 = vsel %vm262_vm1, %v728_v35, %v729_v34 }
  0x8a   : > { %v732_v37 = vpop.permute.xlu0 %731  ;;  %v263_v43 = vsel %vm262_vm1, %v738_v36, %v728_v35 }
  0x8b   : > { %v734_v39 = vunpack.i.h.bf16 %v732_v37  ;;  %v733_v40 = vunpack.i.l.bf16 %v732_v37  ;;  %v742_v41 = vpop.permute.xlu1 %741 }
  0x8c   : > { %v744_v46 = vunpack.i.h.bf16 %v742_v41  ;;  %v743_v47 = vunpack.i.l.bf16 %v742_v41 }
  0x8d   : > { %v265_v44 = vsel %vm262_vm1, %v739_v38, %v733_v40  ;;  %v266_v45 = vsel %vm262_vm1, %v733_v40, %v734_v39 }
  0x8e   : > { %v660_v49 = vpack.c.bf16 %v266_v45, %v264_v42  ;;  %v663_v50 = vpack.c.bf16 %v265_v44, %v263_v43  ;;  %v747_v51 = vpop.permute.xlu0 %746  ;;  %v268_v58 = vsel %vm262_vm1, %v743_v47, %v744_v46 }
  0x8f   : > { %v749_v53 = vunpack.i.h.bf16 %v747_v51  ;;  %v748_v54 = vunpack.i.l.bf16 %v747_v51  ;;  %v752_v55 = vpop.permute.xlu1 %751 }
  0x90   : > { %v754_v56 = vunpack.i.h.bf16 %v752_v55  ;;  %v753_v57 = vunpack.i.l.bf16 %v752_v55  ;;  %662 = vmatprep.subr.msk.bf16.mxu0 %vm889_vm4, %v660_v49  ;;  %696 = vmatprep.subr.msk.bf16.mxu1 %vm889_vm4, %v660_v49 }
  0x91   : > { %v270_v59 = vsel %vm262_vm1, %v748_v54, %v749_v53  ;;  %665 = vmatpush1.bf16.msk.msra.mxu0 %vm893_vm5, %v663_v50  ;;  %704 = vmatpush1.bf16.msk.msra.mxu1 %vm893_vm5, %v663_v50 }
  0x92   : > { %v666_v60 = vpack.c.bf16 %v270_v59, %v268_v58  ;;  %v269_v61 = vsel %vm262_vm1, %v754_v56, %v748_v54  ;;  %v267_v62 = vsel %vm262_vm1, %v753_v57, %v743_v47  ;;  %v757_v63 = vpop.permute.xlu0 %756 }
  0x93   : > { %v669_v0 = vpack.c.bf16 %v269_v61, %v267_v62  ;;  %v759_v1 = vunpack.i.h.bf16 %v757_v63  ;;  %v758_v2 = vunpack.i.l.bf16 %v757_v63  ;;  %v762_v3 = vpop.permute.xlu1 %761 }
  0x94   : > { %v764_v4 = vunpack.i.h.bf16 %v762_v3  ;;  %v763_v5 = vunpack.i.l.bf16 %v762_v3  ;;  %668 = vmatprep.subr.msk.bf16.mxu0 %vm889_vm4, %v666_v60  ;;  %697 = vmatprep.subr.msk.bf16.mxu1 %vm889_vm4, %v666_v60 }
  0x95   : > { %v325_v6 = vsel %vm323_vm7, %v758_v2, %v759_v1  ;;  %671 = vmatpush1.bf16.msk.msra.mxu0 %vm893_vm5, %v669_v0  ;;  %705 = vmatpush1.bf16.msk.msra.mxu1 %vm893_vm5, %v669_v0  ;;  %v419_v0 = vld [vmem:[%s992_s1] sm:$0xff]  ;;  %v420_v1 = vld [vmem:[%s992_s1 + $0x8] sm:$0xff] }
  0x96   : > { %v327_v7 = vsel %vm323_vm7, %v763_v5, %v764_v4  ;;  %v767_v8 = vpop.permute.xlu0 %766 }
  0x97   : > { %v672_v10 = vpack.c.bf16 %v327_v7, %v325_v6  ;;  %v769_v11 = vunpack.i.h.bf16 %v767_v8  ;;  %v768_v12 = vunpack.i.l.bf16 %v767_v8  ;;  %v772_v13 = vpop.permute.xlu1 %771 }
  0x98   : > { %v774_v14 = vunpack.i.h.bf16 %v772_v13  ;;  %v773_v15 = vunpack.i.l.bf16 %v772_v13 }
  0x99   : > { %674 = vmatprep.subr.msk.bf16.mxu0 %vm922_vm9, %v672_v10  ;;  %698 = vmatprep.subr.msk.bf16.mxu1 %vm922_vm9, %v672_v10  ;;  %v324_v16 = vsel %vm323_vm7, %v768_v12, %v758_v2  ;;  %v326_v17 = vsel %vm323_vm7, %v769_v11, %v763_v5 }
  0x9a   : > { %v777_v18 = vpop.permute.xlu0 %776  ;;  %v675_v19 = vpack.c.bf16 %v326_v17, %v324_v16  ;;  %v329_v26 = vsel %vm323_vm7, %v773_v15, %v774_v14 }
  0x9b   : > { %v779_v20 = vunpack.i.h.bf16 %v777_v18  ;;  %v778_v21 = vunpack.i.l.bf16 %v777_v18  ;;  %v782_v22 = vpop.permute.xlu1 %781 }
  0x9c   : > { %v784_v23 = vunpack.i.h.bf16 %v782_v22  ;;  %v783_v24 = vunpack.i.l.bf16 %v782_v22  ;;  %676 = vmatpush1.bf16.msra.mxu0 %v675_v19  ;;  %706 = vmatpush1.bf16.msra.mxu1 %v675_v19 }
  0x9d   : > { %v331_v27 = vsel %vm323_vm7, %v778_v21, %v779_v20 }
  0x9e   : > { %v677_v28 = vpack.c.bf16 %v331_v27, %v329_v26  ;;  %v787_v30 = vpop.permute.xlu0 %786  ;;  %v328_v31 = vsel %vm323_vm7, %v783_v24, %v773_v15  ;;  %v330_v32 = vsel %vm323_vm7, %v784_v23, %v778_v21 }
  0x9f   : > { %v789_v34 = vunpack.i.h.bf16 %v787_v30  ;;  %v788_v35 = vunpack.i.l.bf16 %v787_v30  ;;  %v792_v29 = vpop.permute.xlu1 %791  ;;  %v680_v36 = vpack.c.bf16 %v330_v32, %v328_v31 }
  0xa0   : > { %v794_v33 = vunpack.i.h.bf16 %v792_v29  ;;  %v793_v37 = vunpack.i.l.bf16 %v792_v29  ;;  %679 = vmatprep.subr.msk.bf16.mxu0 %vm922_vm9, %v677_v28  ;;  %699 = vmatprep.subr.msk.bf16.mxu1 %vm922_vm9, %v677_v28 }
  0xa1   : > { %v388_v38 = vsel %vm386_vm11, %v788_v35, %v789_v34  ;;  %681 = vmatpush1.bf16.msra.mxu0 %v680_v36  ;;  %707 = vmatpush1.bf16.msra.mxu1 %v680_v36 }
  0xa2   : > { %v390_v39 = vsel %vm386_vm11, %v793_v37, %v794_v33  ;;  %v797_v40 = vpop.permute.xlu0 %796 }
  0xa3   : > { %v682_v42 = vpack.c.bf16 %v390_v39, %v388_v38  ;;  %v799_v43 = vunpack.i.h.bf16 %v797_v40  ;;  %v798_v44 = vunpack.i.l.bf16 %v797_v40  ;;  %v802_v45 = vpop.permute.xlu1 %801 }
  0xa4   : > { %v804_v48 = vunpack.i.h.bf16 %v802_v45  ;;  %v803_v49 = vunpack.i.l.bf16 %v802_v45 }
  0xa5   : > { %v387_v46 = vsel %vm386_vm11, %v798_v44, %v788_v35  ;;  %v389_v47 = vsel %vm386_vm11, %v799_v43, %v793_v37  ;;  %684 = vmatprep.subr.msk.bf16.mxu0 %vm952_vm13, %v682_v42  ;;  %700 = vmatprep.subr.msk.bf16.mxu1 %vm952_vm13, %v682_v42 }
  0xa6   : > { %v685_v50 = vpack.c.bf16 %v389_v47, %v387_v46  ;;  %v807_v51 = vpop.permute.xlu0 %806  ;;  %v392_v58 = vsel %vm386_vm11, %v803_v49, %v804_v48 }
  0xa7   : > { %v809_v53 = vunpack.i.h.bf16 %v807_v51  ;;  %v808_v54 = vunpack.i.l.bf16 %v807_v51  ;;  %v812_v55 = vpop.permute.xlu1 %811 }
  0xa8   : > { %v814_v56 = vunpack.i.h.bf16 %v812_v55  ;;  %v813_v57 = vunpack.i.l.bf16 %v812_v55  ;;  %687 = vmatpush1.bf16.msk.msra.mxu0 %vm893_vm5, %v685_v50  ;;  %708 = vmatpush1.bf16.msk.msra.mxu1 %vm893_vm5, %v685_v50 }
  0xa9   : > { %v394_v59 = vsel %vm386_vm11, %v808_v54, %v809_v53 }
  0xaa   : > { %v688_v60 = vpack.c.bf16 %v394_v59, %v392_v58  ;;  %v393_v61 = vsel %vm386_vm11, %v814_v56, %v808_v54  ;;  %v391_v62 = vsel %vm386_vm11, %v813_v57, %v803_v49 }
  0xab   : > { %v691_v63 = vpack.c.bf16 %v393_v61, %v391_v62 }
  0xac   : > { %690 = vmatprep.subr.msk.bf16.mxu0 %vm952_vm13, %v688_v60  ;;  %701 = vmatprep.subr.msk.bf16.mxu1 %vm952_vm13, %v688_v60 }
  0xad   : > { %693 = vmatpush1.bf16.msk.msra.mxu0 %vm893_vm5, %v691_v63  ;;  %709 = vmatpush1.bf16.msk.msra.mxu1 %vm893_vm5, %v691_v63 }
  0xb0   : > { %530 = vmatmul.mubr.f32.vlgmr.msra.gmra.mrb[0].mxu0 %v419_v0  ;;  %536 = vmatmul.mubr.f32.vlgmr.msra.gmra.mrb[0].mxu1 %v420_v1 }
  0xb7   : > { %v458_v2 = vpop.permute.xlu0 %457 }
  0xb8   : > { %v463_v3 = vpop.permute.xlu1 %462 }
 0x183   : > { %v531_v4 = vpop.f32.mrb[0].mxu0  ;;  %v537_v52 = vpop.f32.mrb[0].mxu1 }
 0x184   : > { %v532_v5 = vadd.f32 %v531_v4, %v458_v2  ;;  %v538_v6 = vadd.f32 %v537_v52, %v463_v3  ;;  %v533_v7 = vpop.f32.mrb[1].mxu0  ;;  %v539_v8 = vpop.f32.mrb[1].mxu1 }
 0x185   : > { %v534_v9 = vadd.f32 %v533_v7, %v458_v2  ;;  %v540_v10 = vadd.f32 %v539_v8, %v463_v3 }
 0x186   : > { %542 = vst [vmem:[%s170_s5] sm:$0xff] %v532_v5  ;;  %544 = vst [vmem:[%s170_s5 + $0x10] sm:$0xff] %v538_v6 }
 0x187   : > { %543 = vst [vmem:[%s170_s5 + $0x8] sm:$0xff] %v534_v9  ;;  %545 = vst [vmem:[%s170_s5 + $0x18] sm:$0xff] %v540_v10 }
 0x188 PF: > { %s13_s12 = sadd.s32 1, %s823_s12  }
 0x189   : > { %p10_p4 = scmp.ge.s32.totalorder %s13_s12, 4  }
 0x18b   :  { %12 = sbr.rel (!%p10_p4) target bundleno = 1 (0x1), region = 62 }

// kernel: patch_inflated_forward.2
= control target key start
LH: loop header
LB: loop body
LE: loop exit
PB: predicated region body
PF: predicated region fallthrough
CT: control target
= control target key end

     0   :  { %s1434_s21 = smov 0   ;;  %s1731_s0 = inlined_call_operand.vmem [shape: f32[2,73,32], index: 0, kind: input, shape index: {}]   ;;  %s1732_s1 = inlined_call_operand.vmem [shape: f32[128,128], index: 1, kind: input, shape index: {}]   ;;  %s1733_s2 = inlined_call_operand.vmem [shape: f32[1,128], index: 2, kind: input, shape index: {}]   ;;  %s1734_s3 = inlined_call_operand.vmem [shape: f32[128,128], index: 3, kind: input, shape index: {}]   ;;  %s1735_s4 = inlined_call_operand.vmem [shape: f32[1,128], index: 4, kind: input, shape index: {}]   ;;  %s1736_s5 = inlined_call_operand.vmem [shape: f32[1,128], index: 5, kind: input, shape index: {}]   ;;  %s1737_s6 = inlined_call_operand.vmem [shape: f32[2,64,128], index: 6, kind: output, shape index: {}]  }
   0x1 LB: > { %s1102_s22 = sadd.s32 4294967295, %s1391_s21   ;;  %p1106_p0 = scmp.ge.s32.totalorder %s1391_s21, 1  ;;  %s1391_s21 = sphi %s1434_s21, %s16_s21  }
   0x2   : > { %p212_p1 = scmp.lt.s32.totalorder %s1391_s21, 3 }
   0x4   : > { %p213_p2 = pnand %p1106_p0, %p212_p1 }
   0x5   : > { %p242_p3 = scmp.lt.s32.totalorder (!%p213_p2), %s1102_s22, 1  ;;  %v262_v0 = vlaneseq (!%p213_p2)  ;;  %v642_v1 = vld [vmem:[%s1732_s1] sm:$0xff] (!%p213_p2)  ;;  %v643_v2 = vld [vmem:[%s1732_s1 + $0x8] sm:$0xff] (!%p213_p2)  ;;  %v644_v4 = vld [vmem:[%s1732_s1 + $0x10] sm:$0xff] (!%p213_p2)  ;;  %vm383_vm0 = vcmask (!%p213_p2), 261120   ;;  %vm417_vm1 = vcmask (!%p213_p2), 1046528  }
   0x6   : > { %216 = sbr.rel (%p213_p2) target bundleno = 908 (0x38c), region = 44  ;;  %v1288_v3 = vpack.c.bf16 (!%p213_p2), %v643_v2, %v642_v1  ;;  %v645_v5 = vld [vmem:[%s1732_s1 + $0x18] sm:$0xff] (!%p213_p2)  ;;  %v646_v8 = vld [vmem:[%s1732_s1 + $0x20] sm:$0xff] (!%p213_p2)  ;;  %v647_v9 = vld [vmem:[%s1732_s1 + $0x28] sm:$0xff] (!%p213_p2)  ;;  %s1393_s19 = smov (!%p213_p2), 64   ;;  %vm483_vm10 = vcmask (!%p213_p2), 523520  }
   0x7   : > { %v1456_v6 = vshrl.u32 (!%p213_p2), %v262_v0, 7  ;;  %v1292_v7 = vpack.c.bf16 (!%p213_p2), %v645_v5, %v644_v4  ;;  %v1296_v13 = vpack.c.bf16 (!%p213_p2), %v647_v9, %v646_v8  ;;  %v648_v15 = vld [vmem:[%s1732_s1 + $0x30] sm:$0xff] (!%p213_p2)  ;;  %v649_v16 = vld [vmem:[%s1732_s1 + $0x38] sm:$0xff] (!%p213_p2)  ;;  %v650_v39 = vld [vmem:[%s1732_s1 + $0x40] sm:$0xff] (!%p213_p2)  ;;  %s1394_s26 = smov (!%p213_p2), 32   ;;  %s1395_s7 = smov (!%p213_p2), 96  }
   0x8   : > { %1289 = vmatprep.subr.bf16.mxu0 (!%p213_p2), %v1288_v3  ;;  %v1300_v31 = vpack.c.bf16 (!%p213_p2), %v649_v16, %v648_v15  ;;  %v651_v40 = vld [vmem:[%s1732_s1 + $0x48] sm:$0xff] (!%p213_p2)  ;;  %v652_v47 = vld [vmem:[%s1732_s1 + $0x50] sm:$0xff] (!%p213_p2)  ;;  %v653_v48 = vld [vmem:[%s1732_s1 + $0x58] sm:$0xff] (!%p213_p2)  ;;  %vm548_vm11 = vcmask (!%p213_p2), 785920   ;;  %vm625_vm12 = vcmask (!%p213_p2), 1048320   ;;  %vm1398_vm13 = vmmov (!%p213_p2), 0  }
   0x9   : > { %v275_v10 = vand.u32 (!%p213_p2), 7, %v1456_v6  ;;  %v264_v11 = vadd.s32 (!%p213_p2), 8, %v1456_v6  ;;  %1291 = vmatpush3.bf16.msra.mxu0 (!%p213_p2), %v1288_v3  ;;  %v266_v12 = vadd.s32 (!%p213_p2), 24, %v1456_v6  ;;  %v265_v27 = vadd.s32 (!%p213_p2), 16, %v1456_v6  ;;  %v654_v55 = vld [vmem:[%s1732_s1 + $0x60] sm:$0xff] (!%p213_p2)  ;;  %v655_v56 = vld [vmem:[%s1732_s1 + $0x68] sm:$0xff] (!%p213_p2) }
   0xa   : > { %1293 = vmatprep.subr.bf16.mxu0 (!%p213_p2), %v1292_v7  ;;  %v1304_v46 = vpack.c.bf16 (!%p213_p2), %v651_v40, %v650_v39  ;;  %v268_v53 = vadd.s32 (!%p213_p2), 40, %v1456_v6  ;;  %v1308_v54 = vpack.c.bf16 (!%p213_p2), %v653_v48, %v652_v47  ;;  %v267_v58 = vadd.s32 (!%p213_p2), 32, %v1456_v6  ;;  %v656_v63 = vld [vmem:[%s1732_s1 + $0x70] sm:$0xff] (!%p213_p2)  ;;  %v657_v0 = vld [vmem:[%s1732_s1 + $0x78] sm:$0xff] (!%p213_p2)  ;;  %v792_v9 = vld [vmem:[%s1734_s3 + $0x48] sm:$0xff] (!%p213_p2) }
   0xb   : > { %v282_v14 = vand.u32 (!%p213_p2), 7, %v264_v11  ;;  %vm1482_vm2 = vcmp.eq.s32.totalorder (!%p213_p2), %v275_v10, 7  ;;  %v296_v28 = vand.u32 (!%p213_p2), 7, %v266_v12  ;;  %v289_v43 = vand.u32 (!%p213_p2), 7, %v265_v27 }
   0xc   : > { %v310_v60 = vand.u32 (!%p213_p2), 7, %v268_v53  ;;  %v1312_v62 = vpack.c.bf16 (!%p213_p2), %v655_v56, %v654_v55  ;;  %v303_v2 = vand.u32 (!%p213_p2), 7, %v267_v58  ;;  %v1316_v5 = vpack.c.bf16 (!%p213_p2), %v657_v0, %v656_v63  ;;  %v783_v58 = vld [vmem:[%s1734_s3] sm:$0xff] (!%p213_p2)  ;;  %v786_v63 = vld [vmem:[%s1734_s3 + $0x18] sm:$0xff] (!%p213_p2) }
   0xd   : > { %s1751_s22 = smov (!%p242_p3, %s1102_s22), 1  ;;  %1295 = vmatpush3.bf16.msra.mxu0 %v1292_v7  ;;  %vm1509_vm3 = vcmp.eq.s32.totalorder %v282_v14, 7  ;;  %vm1539_vm4 = vcmp.eq.s32.totalorder %v296_v28, 7  ;;  %vm1556_vm5 = vcmp.eq.s32.totalorder %v289_v43, 7  ;;  %v270_v11 = vadd.s32 56, %v1456_v6 }
   0xe   : > { %s1368_s11 = smul.u32 80, %s1751_s22  ;;  %1297 = vmatprep.subr.bf16.mxu0 %v1296_v13  ;;  %vm1586_vm6 = vcmp.eq.s32.totalorder %v310_v60, 7  ;;  %vm1598_vm7 = vcmp.eq.s32.totalorder %v303_v2, 7  ;;  %v269_v15 = vadd.s32 48, %v1456_v6  ;;  %v788_v2 = vld [vmem:[%s1734_s3 + $0x28] sm:$0xff]  ;;  %s1115_s10 = sshll.u32 %s1751_s22, 6 }
   0xf   : > { %v324_v16 = vand.u32 7, %v270_v11  ;;  %v793_v11 = vld [vmem:[%s1734_s3 + $0x50] sm:$0xff]  ;;  %s251_s13 = scalar_lea.vmem %s1737_s6, %s1115_s10 }
  0x10   : > { %s1471_s14 = scalar_lea.vmem %s1731_s0, %s1368_s11 }
  0x11   : > { %v252_v17 = vld [vmem:[%s1471_s14] sm:$0xff]  ;;  %v253_v18 = vld [vmem:[%s1471_s14 + $0x8] sm:$0xff]  ;;  %v254_v19 = vld [vmem:[%s1471_s14 + $0x10] sm:$0xff]  ;;  %1299 = vmatpush3.bf16.msra.mxu0 %v1296_v13  ;;  %vm374_vm8 = vcmp.eq.s32.totalorder %v324_v16, 7 }
  0x12   : > { %v418_v21 = vrot.slane %v252_v17, 1  ;;  %v419_v22 = vrot.slane %v253_v18, 1  ;;  %524 = vrot.lane.b32.xlu1 %v253_v18, %s1393_s19  ;;  %v421_v23 = vrot.slane %v254_v19, 1  ;;  %v1488_v24 = vld [vmem:[%s1471_s14 + $0x18] sm:$0xff]  ;;  %v1491_v25 = vld [vmem:[%s1471_s14 + $0x20] sm:$0xff]  ;;  %384 = vst.msk [vmem:[#allocation2] sm:$0xff] %vm383_vm0, %v252_v17  ;;  %1301 = vmatprep.subr.bf16.mxu0 %v1300_v31 }
  0x13   : > { %385 = vst.msk [vmem:[#allocation2 + $0x8] sm:$0xff] %vm383_vm0, %v253_v18  ;;  %386 = vst.msk [vmem:[#allocation2 + $0x10] sm:$0xff] %vm383_vm0, %v254_v19  ;;  %v423_v26 = vrot.slane %v1488_v24, 1  ;;  %v1499_v29 = vld [vmem:[%s1471_s14 + $0x28] sm:$0xff]  ;;  %v1502_v30 = vld [vmem:[%s1471_s14 + $0x30] sm:$0xff]  ;;  %v425_v35 = vrot.slane %v1491_v25, 1 }
  0x14   : > { %387 = vst.msk [vmem:[#allocation2 + $0x18] sm:$0xff] %vm383_vm0, %v1488_v24  ;;  %388 = vst.msk [vmem:[#allocation2 + $0x20] sm:$0xff] %vm383_vm0, %v1491_v25  ;;  %v420_v32 = vsel %vm417_vm1, %v418_v21, %v419_v22  ;;  %v422_v34 = vsel %vm417_vm1, %v419_v22, %v421_v23  ;;  %v1516_v36 = vld [vmem:[%s1471_s14 + $0x38] sm:$0xff]  ;;  %v427_v52 = vrot.slane %v1499_v29, 1  ;;  %v429_v61 = vrot.slane %v1502_v30, 1  ;;  %v260_v12 = vld [vmem:[%s1471_s14 + $0x40] sm:$0xff] }
  0x15   : > { %389 = vst.msk [vmem:[#allocation2 + $0x28] sm:$0xff] %vm383_vm0, %v1499_v29  ;;  %390 = vst.msk [vmem:[#allocation2 + $0x30] sm:$0xff] %vm383_vm0, %v1502_v30  ;;  %v443_v37 = vsel %vm1482_vm2, 0.0, %v420_v32  ;;  %v424_v38 = vsel %vm417_vm1, %v421_v23, %v423_v26  ;;  %v444_v41 = vsel %vm1509_vm3, 0.0, %v422_v34  ;;  %v426_v45 = vsel %vm417_vm1, %v423_v26, %v425_v35  ;;  %1303 = vmatpush3.bf16.msra.mxu0 %v1300_v31  ;;  %v797_v16 = vld [vmem:[%s1734_s3 + $0x70] sm:$0xff] }
  0x16   : > { %391 = vst.msk [vmem:[#allocation2 + $0x38] sm:$0xff] %vm383_vm0, %v1516_v36  ;;  %459 = vrot.lane.b32.xlu0 %v443_v37, %s1394_s26  ;;  %526 = vrot.lane.b32.xlu1 %v254_v19, %s1393_s19  ;;  %v586_v42 = vsel %vm1509_vm3, 0.0, %v424_v38  ;;  %v585_v49 = vsel %vm1482_vm2, 0.0, %v422_v34  ;;  %v446_v50 = vsel %vm1539_vm4, 0.0, %v426_v45  ;;  %v445_v57 = vsel %vm1556_vm5, 0.0, %v424_v38 }
  0x17   : > { %1305 = vmatprep.subr.bf16.mxu0 %v1304_v46  ;;  %v428_v59 = vsel %vm417_vm1, %v425_v35, %v427_v52  ;;  %v430_v4 = vsel %vm417_vm1, %v427_v52, %v429_v61  ;;  %v587_v7 = vsel %vm1556_vm5, 0.0, %v426_v45  ;;  %v431_v10 = vrot.slane %v1516_v36, 1 }
  0x18   : > { %v588_v1 = vsel %vm1539_vm4, 0.0, %v428_v59  ;;  %v448_v8 = vsel %vm1586_vm6, 0.0, %v430_v4  ;;  %v447_v13 = vsel %vm1598_vm7, 0.0, %v428_v59  ;;  %v433_v17 = vrot.slane %v260_v12, 1  ;;  %v784_v59 = vld [vmem:[%s1734_s3 + $0x8] sm:$0xff]  ;;  %v794_v12 = vld [vmem:[%s1734_s3 + $0x58] sm:$0xff] }
  0x19   : > { %1307 = vmatpush3.bf16.msra.mxu0 %v1304_v46  ;;  %v432_v14 = vsel %vm417_vm1, %v429_v61, %v431_v10  ;;  %v317_v19 = vand.u32 7, %v269_v15  ;;  %v589_v21 = vsel %vm1598_vm7, 0.0, %v430_v4  ;;  %v1321_v60 = vpack.c.bf16 %v784_v59, %v783_v58  ;;  %v789_v4 = vld [vmem:[%s1734_s3 + $0x30] sm:$0xff]  ;;  %v796_v15 = vld [vmem:[%s1734_s3 + $0x68] sm:$0xff] }
  0x1a   : > { %461 = vrot.lane.b32.xlu0 %v444_v41, %s1394_s26  ;;  %603 = vrot.lane.b32.xlu1 %v586_v42, %s1395_s7  ;;  %v590_v18 = vsel %vm1586_vm6, 0.0, %v432_v14  ;;  %v434_v20 = vsel %vm417_vm1, %v431_v10, %v433_v17  ;;  %v1397_v61 = vmov 0.0|0.0  }
  0x1b   : > { %1309 = vmatprep.subr.bf16.mxu0 %v1308_v54  ;;  %v450_v22 = vsel %vm374_vm8, 0.0, %v434_v20  ;;  %vm373_vm9 = vcmp.eq.s32.totalorder %v317_v19, 7  ;;  %1320 = vmatprep.subr.bf16.mxu1 %v1397_v61 }
  0x1c   : > { %v449_v23 = vsel %vm373_vm9, 0.0, %v432_v14  ;;  %1322 = vmatpush3.bf16.msra.mxu1 %v1321_v60  ;;  %v795_v14 = vld [vmem:[%s1734_s3 + $0x60] sm:$0xff] }
  0x1d   : > { %1311 = vmatpush3.bf16.msra.mxu0 %v1308_v54  ;;  %1323 = vmatprep.subr.bf16.mxu1 %v1397_v61  ;;  %v1339_v17 = vpack.c.bf16 %v796_v15, %v795_v14 }
  0x1e   : > { %601 = vrot.lane.b32.xlu0 %v585_v49, %s1395_s7  ;;  %465 = vrot.lane.b32.xlu1 %v446_v50, %s1394_s26 }
  0x1f   : > { %1313 = vmatprep.subr.bf16.mxu0 %v1312_v62 }
  0x21   : > { %1315 = vmatpush3.bf16.msra.mxu0 %v1312_v62  ;;  %v785_v62 = vld [vmem:[%s1734_s3 + $0x10] sm:$0xff] }
  0x22   : > { %463 = vrot.lane.b32.xlu0 %v445_v57, %s1394_s26  ;;  %530 = vrot.lane.b32.xlu1 %v1491_v25, %s1393_s19  ;;  %v591_v25 = vsel %vm373_vm9, 0.0, %v434_v20  ;;  %v1324_v0 = vpack.c.bf16 %v786_v63, %v785_v62 }
  0x23   : > { %1317 = vmatprep.subr.bf16.mxu0 %v1316_v5 }
  0x24   : > { %1325 = vmatpush3.bf16.msra.mxu1 %v1324_v0 }
  0x25   : > { %1319 = vmatpush3.bf16.msra.mxu0 %v1316_v5  ;;  %1326 = vmatprep.subr.bf16.mxu1 %v1397_v61  ;;  %v790_v5 = vld [vmem:[%s1734_s3 + $0x38] sm:$0xff] }
  0x26   : > { %528 = vrot.lane.b32.xlu0 %v1488_v24, %s1393_s19  ;;  %607 = vrot.lane.b32.xlu1 %v588_v1, %s1395_s7  ;;  %v1396_v24 = vmov 0.0   ;;  %v787_v1 = vld [vmem:[%s1734_s3 + $0x20] sm:$0xff] }
  0x27   : > { %1344 = vmatprep.subr.bf16.mxu0 %v1397_v61  ;;  %v1327_v3 = vpack.c.bf16 %v788_v2, %v787_v1  ;;  %1250 = vmatprep.mubr.msk.f32.mxu1 %vm1398_vm13, %v1396_v24 }
  0x29   : > { %1328 = vmatpush3.bf16.msra.mxu1 %v1327_v3 }
  0x2a   : > { %605 = vrot.lane.b32.xlu0 %v587_v7, %s1395_s7  ;;  %469 = vrot.lane.b32.xlu1 %v448_v8, %s1394_s26  ;;  %v1330_v7 = vpack.c.bf16 %v790_v5, %v789_v4  ;;  %v791_v8 = vld [vmem:[%s1734_s3 + $0x40] sm:$0xff] }
  0x2b   : > { %1329 = vmatprep.subr.bf16.mxu1 %v1397_v61  ;;  %v1333_v10 = vpack.c.bf16 %v792_v9, %v791_v8 }
  0x2d   : > { %1331 = vmatpush3.bf16.msra.mxu1 %v1330_v7 }
  0x2e   : > { %467 = vrot.lane.b32.xlu0 %v447_v13, %s1394_s26  ;;  %534 = vrot.lane.b32.xlu1 %v1502_v30, %s1393_s19  ;;  %v1336_v13 = vpack.c.bf16 %v794_v12, %v793_v11 }
  0x2f   : > { %1332 = vmatprep.subr.bf16.mxu1 %v1397_v61 }
  0x31   : > { %1334 = vmatpush3.bf16.msra.mxu1 %v1333_v10 }
  0x32   : > { %532 = vrot.lane.b32.xlu0 %v1499_v29, %s1393_s19  ;;  %611 = vrot.lane.b32.xlu1 %v590_v18, %s1395_s7  ;;  %v798_v18 = vld [vmem:[%s1734_s3 + $0x78] sm:$0xff] }
  0x33   : > { %1335 = vmatprep.subr.bf16.mxu1 %v1397_v61  ;;  %v1342_v19 = vpack.c.bf16 %v798_v18, %v797_v16 }
  0x35   : > { %1337 = vmatpush3.bf16.msra.mxu1 %v1336_v13 }
  0x36   : > { %609 = vrot.lane.b32.xlu0 %v589_v21, %s1395_s7  ;;  %473 = vrot.lane.b32.xlu1 %v450_v22, %s1394_s26 }
  0x37   : > { %1338 = vmatprep.subr.bf16.mxu1 %v1397_v61 }
  0x39   : > { %1340 = vmatpush3.bf16.msra.mxu1 %v1339_v17 }
  0x3a   : > { %471 = vrot.lane.b32.xlu0 %v449_v23, %s1394_s26  ;;  %538 = vrot.lane.b32.xlu1 %v1396_v24, %s1393_s19 }
  0x3b   : > { %1341 = vmatprep.subr.bf16.mxu1 %v1397_v61 }
  0x3d   : > { %1343 = vmatpush3.bf16.msra.mxu1 %v1342_v19 }
  0x3e   : > { %536 = vrot.lane.b32.xlu0 %v1516_v36, %s1393_s19  ;;  %615 = vrot.lane.b32.xlu1 %v1396_v24, %s1395_s7 }
  0x42   : > { %613 = vrot.lane.b32.xlu0 %v591_v25, %s1395_s7  ;;  %v1110_v25 = vld [vmem:[%s1733_s2] ss:$0 sm:$0xff] }
  0x84   : > { %v525_v26 = vpop.permute.xlu1 %524 }
  0x88   : > { %v460_v27 = vpop.permute.xlu0 %459  ;;  %v527_v28 = vpop.permute.xlu1 %526 }
  0x89   : > { %484 = vst.msk [vmem:[#allocation2] sm:$0xff] %vm483_vm10, %v460_v27 }
  0x8a   : > { %549 = vst.msk [vmem:[#allocation2] sm:$0xff] %vm548_vm11, %v525_v26 }
  0x8c   : > { %v462_v29 = vpop.permute.xlu0 %461  ;;  %v604_v30 = vpop.permute.xlu1 %603 }
  0x8d   : > { %485 = vst.msk [vmem:[#allocation2 + $0x8] sm:$0xff] %vm483_vm10, %v462_v29 }
  0x8e   : > { %550 = vst.msk [vmem:[#allocation2 + $0x8] sm:$0xff] %vm548_vm11, %v527_v28 }
  0x8f   : > { %627 = vst.msk [vmem:[#allocation2 + $0x8] sm:$0xff] %vm625_vm12, %v604_v30 }
  0x90   : > { %v602_v31 = vpop.permute.xlu0 %601  ;;  %v466_v32 = vpop.permute.xlu1 %465 }
  0x91   : > { %626 = vst.msk [vmem:[#allocation2] sm:$0xff] %vm625_vm12, %v602_v31 }
  0x92   : > { %487 = vst.msk [vmem:[#allocation2 + $0x18] sm:$0xff] %vm483_vm10, %v466_v32 }
  0x94   : > { %v464_v33 = vpop.permute.xlu0 %463  ;;  %v531_v34 = vpop.permute.xlu1 %530 }
  0x95   : > { %486 = vst.msk [vmem:[#allocation2 + $0x10] sm:$0xff] %vm483_vm10, %v464_v33 }
  0x96   : > { %552 = vst.msk [vmem:[#allocation2 + $0x18] sm:$0xff] %vm548_vm11, %v531_v34  ;;  %v635_v35 = vld [vmem:[#allocation2 + $0x8] sm:$0xff] }
  0x98   : > { %v529_v36 = vpop.permute.xlu0 %528  ;;  %v634_v37 = vld [vmem:[#allocation2] sm:$0xff]  ;;  %v608_v38 = vpop.permute.xlu1 %607 }
  0x99   : > { %551 = vst.msk [vmem:[#allocation2 + $0x10] sm:$0xff] %vm548_vm11, %v529_v36  ;;  %1206 = vmatprep.mubr.f32.mxu0 %v634_v37 }
  0x9a   : > { %629 = vst.msk [vmem:[#allocation2 + $0x18] sm:$0xff] %vm625_vm12, %v608_v38  ;;  %1207 = vmatmul.mubr.f32.vlgmr.msra.gmra.mrb[0].mxu0 %v635_v35 }
  0x9b   : > { %1346 = vmatpush3.bf16.msra.mxu0 %v1321_v60 }
  0x9c   : > { %v606_v39 = vpop.permute.xlu0 %605  ;;  %v470_v40 = vpop.permute.xlu1 %469  ;;  %1347 = vmatprep.subr.bf16.mxu0 %v1397_v61 }
  0x9d   : > { %628 = vst.msk [vmem:[#allocation2 + $0x10] sm:$0xff] %vm625_vm12, %v606_v39 }
  0x9e   : > { %489 = vst.msk [vmem:[#allocation2 + $0x28] sm:$0xff] %vm483_vm10, %v470_v40 }
  0x9f   : > { %1349 = vmatpush3.bf16.msra.mxu0 %v1324_v0 }
  0xa0   : > { %v468_v41 = vpop.permute.xlu0 %467  ;;  %v535_v42 = vpop.permute.xlu1 %534  ;;  %1350 = vmatprep.subr.bf16.mxu0 %v1397_v61 }
  0xa1   : > { %488 = vst.msk [vmem:[#allocation2 + $0x20] sm:$0xff] %vm483_vm10, %v468_v41  ;;  %v637_v43 = vld [vmem:[#allocation2 + $0x18] sm:$0xff] }
  0xa2   : > { %554 = vst.msk [vmem:[#allocation2 + $0x28] sm:$0xff] %vm548_vm11, %v535_v42 }
  0xa3   : > { %1352 = vmatpush3.bf16.msra.mxu0 %v1327_v3 }
  0xa4   : > { %v533_v44 = vpop.permute.xlu0 %532  ;;  %v636_v45 = vld [vmem:[#allocation2 + $0x10] sm:$0xff]  ;;  %v612_v46 = vpop.permute.xlu1 %611  ;;  %1353 = vmatprep.subr.bf16.mxu0 %v1397_v61 }
  0xa5   : > { %553 = vst.msk [vmem:[#allocation2 + $0x20] sm:$0xff] %vm548_vm11, %v533_v44  ;;  %1209 = vmatprep.mubr.f32.mxu0 %v636_v45 }
  0xa6   : > { %631 = vst.msk [vmem:[#allocation2 + $0x28] sm:$0xff] %vm625_vm12, %v612_v46  ;;  %1210 = vmatmul.mubr.f32.gmra.mrb[2].mxu0 %v637_v43 }
  0xa7   : > { %1355 = vmatpush3.bf16.msra.mxu0 %v1330_v7 }
  0xa8   : > { %v610_v47 = vpop.permute.xlu0 %609  ;;  %v474_v48 = vpop.permute.xlu1 %473  ;;  %1356 = vmatprep.subr.bf16.mxu0 %v1397_v61 }
  0xa9   : > { %630 = vst.msk [vmem:[#allocation2 + $0x20] sm:$0xff] %vm625_vm12, %v610_v47 }
  0xaa   : > { %491 = vst.msk [vmem:[#allocation2 + $0x38] sm:$0xff] %vm483_vm10, %v474_v48 }
  0xab   : > { %1358 = vmatpush3.bf16.msra.mxu0 %v1333_v10 }
  0xac   : > { %v472_v49 = vpop.permute.xlu0 %471  ;;  %v539_v50 = vpop.permute.xlu1 %538  ;;  %1359 = vmatprep.subr.bf16.mxu0 %v1397_v61 }
  0xad   : > { %490 = vst.msk [vmem:[#allocation2 + $0x30] sm:$0xff] %vm483_vm10, %v472_v49  ;;  %v639_v51 = vld [vmem:[#allocation2 + $0x28] sm:$0xff] }
  0xae   : > { %556 = vst.msk [vmem:[#allocation2 + $0x38] sm:$0xff] %vm548_vm11, %v539_v50  ;;  %v871_v50 = vsub.s32 0, %v1456_v6 }
  0xaf   : > { %1361 = vmatpush3.bf16.msra.mxu0 %v1336_v13 }
  0xb0   : > { %v537_v52 = vpop.permute.xlu0 %536  ;;  %v638_v53 = vld [vmem:[#allocation2 + $0x20] sm:$0xff]  ;;  %v616_v54 = vpop.permute.xlu1 %615  ;;  %1362 = vmatprep.subr.bf16.mxu0 %v1397_v61 }
  0xb1   : > { %555 = vst.msk [vmem:[#allocation2 + $0x30] sm:$0xff] %vm548_vm11, %v537_v52  ;;  %1212 = vmatprep.mubr.f32.mxu0 %v638_v53 }
  0xb2   : > { %633 = vst.msk [vmem:[#allocation2 + $0x38] sm:$0xff] %vm625_vm12, %v616_v54  ;;  %1213 = vmatmul.mubr.f32.gmra.mrb[4].mxu0 %v639_v51 }
  0xb3   : > { %1364 = vmatpush3.bf16.msra.mxu0 %v1339_v17 }
  0xb4   : > { %v614_v55 = vpop.permute.xlu0 %613  ;;  %1365 = vmatprep.subr.bf16.mxu0 %v1397_v61 }
  0xb5   : > { %632 = vst.msk [vmem:[#allocation2 + $0x30] sm:$0xff] %vm625_vm12, %v614_v55 }
  0xb7   : > { %1367 = vmatpush3.bf16.msra.mxu0 %v1342_v19 }
  0xb9   : > { %v641_v56 = vld [vmem:[#allocation2 + $0x38] sm:$0xff] }
  0xbc   : > { %v640_v57 = vld [vmem:[#allocation2 + $0x30] sm:$0xff] }
  0xbd   : > { %1215 = vmatprep.mubr.f32.mxu0 %v640_v57 }
  0xbe   : > { %1216 = vmatmul.mubr.f32.gmra.mrb[6].mxu0 %v641_v56 }
  0xbf   : > { %1285 = vmatprep.mubr.msk.f32.mxu0 %vm1398_vm13, %v1396_v24 }
 0x16d   : > { %v1208_v20 = vpop.f32.mrb[0].mxu0 }
 0x16e   : > { %v731_v21 = vpop.f32.mrb[1].mxu0  ;;  %v737_v26 = vadd.f32 %v1208_v20, %v1110_v25 }
 0x16f   : > { %v732_v27 = vadd.f32 %v1110_v25, %v731_v21 }
 0x171   : > { %v770_v30 = vadd.f32 %v737_v26, %v732_v27 }
 0x179   : > { %v1211_v22 = vpop.f32.mrb[2].mxu0 }
 0x17a   : > { %v741_v23 = vpop.f32.mrb[3].mxu0  ;;  %v747_v32 = vadd.f32 %v1211_v22, %v1110_v25 }
 0x17b   : > { %v742_v28 = vadd.f32 %v1110_v25, %v741_v23 }
 0x17d   : > { %v771_v31 = vadd.f32 %v770_v30, %v742_v28 }
 0x17f   : > { %v772_v34 = vadd.f32 %v771_v31, %v747_v32 }
 0x185   : > { %v1214_v29 = vpop.f32.mrb[4].mxu0 }
 0x186   : > { %v751_v24 = vpop.f32.mrb[5].mxu0  ;;  %v757_v36 = vadd.f32 %v1214_v29, %v1110_v25 }
 0x187   : > { %v752_v33 = vadd.f32 %v1110_v25, %v751_v24 }
 0x189   : > { %v773_v35 = vadd.f32 %v772_v34, %v752_v33 }
 0x18b   : > { %v774_v40 = vadd.f32 %v773_v35, %v757_v36 }
 0x191   : > { %v1217_v37 = vpop.f32.mrb[6].mxu0 }
 0x192   : > { %v761_v38 = vpop.f32.mrb[7].mxu0  ;;  %v767_v41 = vadd.f32 %v1217_v37, %v1110_v25 }
 0x193   : > { %v762_v39 = vadd.f32 %v1110_v25, %v761_v38  ;;  %v1111_v25 = vld [vmem:[%s1735_s4] ss:$0 sm:$0xff] }
 0x195   : > { %v775_v42 = vadd.f32 %v774_v40, %v762_v39 }
 0x197   : > { %v776_v43 = vadd.f32 %v775_v42, %v767_v41 }
 0x199   : > { %v777_v44 = vrot.slane %v776_v43, 4 }
 0x19b   : > { %v778_v45 = vadd.f32 %v777_v44, %v776_v43 }
 0x19d   : > { %v779_v46 = vrot.slane %v778_v45, 2 }
 0x19f   : > { %v780_v47 = vadd.f32 %v779_v46, %v778_v45 }
 0x1a1   : > { %v781_v48 = vrot.slane %v780_v47, 1 }
 0x1a3   : > { %v782_v49 = vadd.f32 %v781_v48, %v780_v47 }
 0x1a5   : > { %1251 = vmatmul.mubr.f32.vlgmr.msra.gmra.mrb[0].mxu1 %v782_v49 }
 0x278   : > { %v865_v51 = vpop.f32.mrb[0].mxu1 }
 0x279   : > { %v872_v52 = vrot.slane %v865_v51, %v871_v50  ;;  %v1252_v53 = vpop.f32.mrb[1].mxu1 }
 0x27b   : > { %v873_v54 = vsub.f32 %v732_v27, %v872_v52  ;;  %v874_v55 = vsub.f32 %v737_v26, %v872_v52  ;;  %v875_v56 = vsub.f32 %v742_v28, %v872_v52  ;;  %v876_v57 = vsub.f32 %v747_v32, %v872_v52 }
 0x27c   : > { %v877_v60 = vsub.f32 %v752_v33, %v872_v52  ;;  %v878_v63 = vsub.f32 %v757_v36, %v872_v52  ;;  %v879_v2 = vsub.f32 %v762_v39, %v872_v52  ;;  %v880_v5 = vsub.f32 %v767_v41, %v872_v52  ;;  %v1112_v33 = vld [vmem:[%s1736_s5] ss:$0 sm:$0xff] }
 0x27d   : > { %v881_v58 = vmul.f32 %v873_v54, %v873_v54  ;;  %v882_v59 = vmul.f32 %v874_v55, %v874_v55  ;;  %v883_v61 = vmul.f32 %v875_v56, %v875_v56  ;;  %v884_v0 = vmul.f32 %v876_v57, %v876_v57 }
 0x27e   : > { %v885_v3 = vmul.f32 %v877_v60, %v877_v60  ;;  %v886_v6 = vmul.f32 %v878_v63, %v878_v63  ;;  %v887_v8 = vmul.f32 %v879_v2, %v879_v2  ;;  %v888_v10 = vmul.f32 %v880_v5, %v880_v5 }
 0x27f   : > { %v889_v62 = vadd.f32 %v882_v59, %v881_v58 }
 0x281   : > { %v890_v1 = vadd.f32 %v889_v62, %v883_v61 }
 0x283   : > { %v891_v4 = vadd.f32 %v890_v1, %v884_v0 }
 0x285   : > { %v892_v7 = vadd.f32 %v891_v4, %v885_v3 }
 0x287   : > { %v893_v9 = vadd.f32 %v892_v7, %v886_v6 }
 0x289   : > { %v894_v11 = vadd.f32 %v893_v9, %v887_v8 }
 0x28b   : > { %v895_v12 = vadd.f32 %v894_v11, %v888_v10 }
 0x28d   : > { %v896_v13 = vrot.slane %v895_v12, 4 }
 0x28f   : > { %v897_v14 = vadd.f32 %v896_v13, %v895_v12 }
 0x291   : > { %v898_v15 = vrot.slane %v897_v14, 2 }
 0x293   : > { %v899_v16 = vadd.f32 %v898_v15, %v897_v14 }
 0x295   : > { %v900_v17 = vrot.slane %v899_v16, 1 }
 0x297   : > { %v901_v18 = vadd.f32 %v900_v17, %v899_v16 }
 0x299   : > { %1286 = vmatmul.mubr.f32.vlgmr.msra.gmra.mrb[8].mxu0 %v901_v18 }
 0x36c   : > { %v968_v19 = vpop.f32.mrb[8].mxu0 }
 0x36d   : > { %v969_v20 = vadd.f32 1e-05, %v968_v19  ;;  %v1287_v21 = vpop.f32.mrb[9].mxu0 }
 0x36f   : > { %1383 = vrsqrt.f32 %v969_v20 }
 0x379   : > { %v1384_v22 = vpop.eup %1383 }
 0x37a   : > { %v976_v23 = vrot.slane %v1384_v22, %v871_v50 }
 0x37c   : > { %v977_v26 = vmul.f32 %v976_v23, %v873_v54  ;;  %v978_v27 = vmul.f32 %v976_v23, %v874_v55  ;;  %v979_v28 = vmul.f32 %v976_v23, %v875_v56  ;;  %v980_v29 = vmul.f32 %v976_v23, %v876_v57 }
 0x37d   : > { %v981_v24 = vmul.f32 %v976_v23, %v877_v60  ;;  %v982_v30 = vmul.f32 %v976_v23, %v878_v63  ;;  %v983_v31 = vmul.f32 %v976_v23, %v879_v2  ;;  %v984_v32 = vmul.f32 %v976_v23, %v880_v5 }
 0x37e   : > { %v992_v34 = vmul.f32 %v1111_v25, %v977_v26  ;;  %v993_v35 = vmul.f32 %v1111_v25, %v978_v27  ;;  %v994_v36 = vmul.f32 %v1111_v25, %v979_v28  ;;  %v995_v37 = vmul.f32 %v1111_v25, %v980_v29 }
 0x37f   : > { %v996_v38 = vmul.f32 %v1111_v25, %v981_v24  ;;  %v997_v39 = vmul.f32 %v1111_v25, %v982_v30  ;;  %v998_v40 = vmul.f32 %v1111_v25, %v983_v31  ;;  %v999_v41 = vmul.f32 %v1111_v25, %v984_v32 }
 0x380   : > { %v1007_v42 = vadd.f32 %v1112_v33, %v992_v34  ;;  %v1008_v43 = vadd.f32 %v1112_v33, %v993_v35  ;;  %v1009_v44 = vadd.f32 %v1112_v33, %v994_v36  ;;  %v1010_v45 = vadd.f32 %v1112_v33, %v995_v37 }
 0x381   : > { %v1011_v46 = vadd.f32 %v1112_v33, %v996_v38  ;;  %v1012_v47 = vadd.f32 %v1112_v33, %v997_v39  ;;  %v1013_v48 = vadd.f32 %v1112_v33, %v998_v40  ;;  %v1014_v49 = vadd.f32 %v1112_v33, %v999_v41 }
 0x382   : > { %vm1015_vm14 = vcmp.ge.f32.partialorder %v1007_v42, 0.0  ;;  %vm1016_vm15 = vcmp.ge.f32.partialorder %v1008_v43, 0.0  ;;  %vm1017_vm0 = vcmp.ge.f32.partialorder %v1009_v44, 0.0  ;;  %vm1018_vm1 = vcmp.ge.f32.partialorder %v1010_v45, 0.0 }
 0x383   : > { %vm1019_vm2 = vcmp.ge.f32.partialorder %v1011_v46, 0.0  ;;  %vm1020_vm3 = vcmp.ge.f32.partialorder %v1012_v47, 0.0  ;;  %vm1021_vm4 = vcmp.ge.f32.partialorder %v1013_v48, 0.0  ;;  %vm1022_vm5 = vcmp.ge.f32.partialorder %v1014_v49, 0.0 }
 0x384   : > { %v1023_v50 = vmul.f32 0.2, %v1007_v42  ;;  %v1024_v51 = vmul.f32 0.2, %v1008_v43  ;;  %v1025_v52 = vmul.f32 0.2, %v1009_v44 }
 0x385   : > { %v1026_v53 = vmul.f32 0.2, %v1010_v45  ;;  %v1027_v54 = vmul.f32 0.2, %v1011_v46  ;;  %v1028_v55 = vmul.f32 0.2, %v1012_v47 }
 0x386   : > { %v1029_v56 = vmul.f32 0.2, %v1013_v48  ;;  %v1030_v57 = vmul.f32 0.2, %v1014_v49  ;;  %v1031_v58 = vsel %vm1015_vm14, %v1007_v42, %v1023_v50  ;;  %v1032_v59 = vsel %vm1016_vm15, %v1008_v43, %v1024_v51 }
 0x387   : > { %v1033_v60 = vsel %vm1017_vm0, %v1009_v44, %v1025_v52  ;;  %v1034_v61 = vsel %vm1018_vm1, %v1010_v45, %v1026_v53  ;;  %v1035_v62 = vsel %vm1019_vm2, %v1011_v46, %v1027_v54  ;;  %v1036_v63 = vsel %vm1020_vm3, %v1012_v47, %v1028_v55  ;;  %1039 = vst [vmem:[%s251_s13] sm:$0xff] %v1031_v58 }
 0x388   : > { %1040 = vst [vmem:[%s251_s13 + $0x8] sm:$0xff] %v1032_v59  ;;  %v1037_v0 = vsel %vm1021_vm4, %v1013_v48, %v1029_v56  ;;  %v1038_v1 = vsel %vm1022_vm5, %v1014_v49, %v1030_v57  ;;  %1041 = vst [vmem:[%s251_s13 + $0x10] sm:$0xff] %v1033_v60 }
 0x389   : > { %1042 = vst [vmem:[%s251_s13 + $0x18] sm:$0xff] %v1034_v61  ;;  %1043 = vst [vmem:[%s251_s13 + $0x20] sm:$0xff] %v1035_v62 }
 0x38a   : > { %1044 = vst [vmem:[%s251_s13 + $0x28] sm:$0xff] %v1036_v63  ;;  %1045 = vst [vmem:[%s251_s13 + $0x30] sm:$0xff] %v1037_v0 }
 0x38b   : > { %1046 = vst [vmem:[%s251_s13 + $0x38] sm:$0xff] %v1038_v1 }
 0x38c PF: > { %s16_s21 = sadd.s32 1, %s1391_s21  }
 0x38d   : > { %p13_p4 = scmp.ge.s32.totalorder %s16_s21, 4  }
 0x38f   :  { %15 = sbr.rel (!%p13_p4) target bundleno = 1 (0x1), region = 74 }

</bundles_post_ra>
